<compile_context>
chip_gen: v6e
topology: v6e:2x2x1
jax: 0.10.0
libtpu: 0.0.40
codegen_flags: <defaults>
</compile_context>

<pallas_src>
import functools

import jax
import jax.numpy as jnp
from jax.experimental import pallas as pl
from jax.experimental.pallas import tpu as pltpu

_LANE = 128


def _round_up(x, m):
    return ((x + m - 1) // m) * m


def _vmem_capacity_bytes():
    """Physical per-core VMEM; falls back to the smallest part (v7x, 64 MiB)."""
    try:
        cap = getattr(pltpu.get_tpu_info(), "vmem_capacity_bytes", None)
        if cap:
            return int(cap)
    except Exception:
        pass
    return 64 * 1024 * 1024


# --------------------- fused multi-layer kernel (A resident) ----------------

def _fused_layers_kernel(a_hbm, x_ref, inv_ref, o_ref, a_vmem, h_ref):
    # grid axis = layer index ("arbitrary", single core); A is copied from HBM
    # exactly once into a *single-buffered* VMEM scratch, h never leaves VMEM.
    layer = pl.program_id(0)

    @pl.when(layer == 0)
    def _():
        pltpu.sync_copy(a_hbm, a_vmem)          # one HBM read of A for the whole stack
        h_ref[...] = x_ref[...]

    acc = jnp.dot(a_vmem[...], h_ref[...], preferred_element_type=jnp.float32)
    h_new = jnp.maximum(acc * inv_ref[...], 0.0)    # f32 1/deg applied in f32 epilogue
    h_ref[...] = h_new.astype(h_ref.dtype)

    @pl.when(layer == pl.num_programs(0) - 1)
    def _():
        o_ref[...] = h_new.astype(o_ref.dtype)


def fused_simpleconv(a_counts_bf16, inv_deg, x_bf16, num_layer, *, vmem_limit):
    n_pad, f_pad = x_bf16.shape
    return pl.pallas_call(
        _fused_layers_kernel,
        grid=(num_layer,),
        out_shape=jax.ShapeDtypeStruct((n_pad, f_pad), jnp.float32),
        in_specs=[
            pl.BlockSpec(memory_space=pl.ANY),               # A stays in HBM, copied once
            pl.BlockSpec((n_pad, f_pad), lambda l: (0, 0)),  # x (tiny, constant block)
            pl.BlockSpec((n_pad, 1), lambda l: (0, 0)),      # f32 1/deg per row
        ],
        out_specs=pl.BlockSpec((n_pad, f_pad), lambda l: (0, 0)),
        scratch_shapes=[
            pltpu.VMEM((n_pad, n_pad), jnp.bfloat16),        # single-buffered A
            pltpu.VMEM((n_pad, f_pad), jnp.bfloat16),        # carried activation h
        ],
        compiler_params=pltpu.CompilerParams(
            dimension_semantics=("arbitrary",),
            vmem_limit_bytes=vmem_limit,
        ),
    )(a_counts_bf16, x_bf16, inv_deg)


# ---------------------- tiled single-layer kernel (fallback) ----------------

def _aggr_relu_kernel(a_ref, inv_ref, h_ref, o_ref, acc_ref, *, tile_k, resident_h):
    # out_tile = relu( (sum_k A_counts[i,k] @ H[k,:]) * inv_deg[i] )
    k = pl.program_id(1)

    @pl.when(k == 0)
    def _():
        acc_ref[...] = jnp.zeros_like(acc_ref)

    if resident_h:
        start = pl.multiple_of(k * tile_k, tile_k)
        hk = h_ref[pl.ds(start, tile_k), :]          # slice of the VMEM-resident H
    else:
        hk = h_ref[...]

    a_bf16 = a_ref[...].astype(jnp.bfloat16)         # int8 counts are exact in bf16
    acc_ref[...] += jnp.dot(a_bf16, hk, preferred_element_type=jnp.float32)

    @pl.when(k == pl.num_programs(1) - 1)
    def _():
        o_ref[...] = jnp.maximum(acc_ref[...] * inv_ref[...], 0.0).astype(o_ref.dtype)


def aggr_relu_tiled(a_counts_i8, inv_deg, h, *, tile_m, tile_k, resident_h,
                    out_dtype, vmem_limit):
    n_pad = a_counts_i8.shape[0]
    f_pad = h.shape[1]
    grid = (n_pad // tile_m, n_pad // tile_k)
    if resident_h:
        # constant block index -> H is DMA'd once per layer (per core), not per row tile
        h_spec = pl.BlockSpec((n_pad, f_pad), lambda i, k: (0, 0))
    else:
        h_spec = pl.BlockSpec((tile_k, f_pad), lambda i, k: (k, 0))
    kernel = functools.partial(_aggr_relu_kernel, tile_k=tile_k, resident_h=resident_h)
    return pl.pallas_call(
        kernel,
        grid=grid,
        out_shape=jax.ShapeDtypeStruct((n_pad, f_pad), out_dtype),
        in_specs=[
            pl.BlockSpec((tile_m, tile_k), lambda i, k: (i, k)),   # int8 A tile
            pl.BlockSpec((tile_m, 1), lambda i, k: (i, 0)),        # f32 1/deg rows
            h_spec,
        ],
        out_specs=pl.BlockSpec((tile_m, f_pad), lambda i, k: (i, 0)),
        scratch_shapes=[pltpu.VMEM((tile_m, f_pad), jnp.float32)],
        compiler_params=pltpu.CompilerParams(
            dimension_semantics=("parallel", "arbitrary"),
            vmem_limit_bytes=vmem_limit,
        ),
    )(a_counts_i8, inv_deg, h)


# ------------------------------ graph prep / plan ---------------------------

def build_graph(edge_index, num_nodes):
    """Dense adjacency counts with self loops + per-row f32 1/deg.

    Matches PyG SimpleConv(aggr='mean', combine_root='self_loop'):
    add_self_loops adds a loop per node regardless of existing (i,i) edges and
    duplicate edges count with multiplicity in the mean.
    """
    src, dst = edge_index
    counts = jnp.zeros((num_nodes, num_nodes), jnp.float32)
    counts = counts.at[dst, src].add(1.0)                 # messages flow src -> dst
    counts = counts + jnp.eye(num_nodes, dtype=jnp.float32)
    inv_deg = 1.0 / jnp.sum(counts, axis=1)               # >= 1 due to self loop
    return counts, inv_deg


def make_plan(counts, inv_deg, n, f, *, force_tiled=False):
    """Pick fused vs tiled path and prepare padded, dtype-cast device arrays."""
    f_pad = _round_up(max(f, 1), _LANE)
    cap = _vmem_capacity_bytes()
    vmem_limit = int(cap * 0.78)          # ~100 MiB on v5e/v6e, ~50 MiB on v7x
    budget = vmem_limit - (8 << 20)       # headroom for Mosaic internal scratch / f32 temps

    # fused path: single-buffered bf16 A scratch + small per-layer buffers/temps
    n_pad_f = _round_up(n, _LANE)
    fused_bytes = 2 * n_pad_f * n_pad_f + 24 * n_pad_f * f_pad + (1 << 20)
    if (not force_tiled) and fused_bytes <= budget:
        n_pad = n_pad_f
        a = (jnp.zeros((n_pad, n_pad), jnp.float32).at[:n, :n].set(counts)
             .astype(jnp.bfloat16))                       # integer counts: exact in bf16
        inv = jnp.zeros((n_pad, 1), jnp.float32).at[:n, 0].set(inv_deg)
        return dict(path="fused", a=a, inv=inv, n=n, n_pad=n_pad, f_pad=f_pad,
                    vmem_limit=vmem_limit)

    # tiled path: rows padded to the full 512 tile (no 128 fallback),
    # reduction block as large as the padding allows.
    tile_m = 512
    n_pad = _round_up(n, tile_m)
    tile_k = 2048 if n_pad % 2048 == 0 else (1024 if n_pad % 1024 == 0 else 512)
    # TODO(synk): >127 parallel edges between one node pair would overflow int8;
    # fall back to bf16 counts in that (pathological) case.
    a = (jnp.zeros((n_pad, n_pad), jnp.float32).at[:n, :n].set(counts)
         .astype(jnp.int8))                               # halves HBM bytes of A
    inv = jnp.zeros((n_pad, 1), jnp.float32).at[:n, 0].set(inv_deg)
    tile_bytes = (4 * tile_m * tile_k          # int8 A double-buffered + bf16 cast temp
                  + 12 * tile_m * f_pad        # f32 out (x2) + f32 accumulator
                  + 2 * tile_k * f_pad         # H slice temp
                  + (2 << 20))                 # slack
    resident_h = (4 * n_pad * f_pad + tile_bytes) <= budget
    return dict(path="tiled", a=a, inv=inv, n=n, n_pad=n_pad, f_pad=f_pad,
                tile_m=tile_m, tile_k=tile_k, resident_h=resident_h,
                vmem_limit=vmem_limit)


def simpleconv_forward(plan, x, num_layer):
    n, f = x.shape
    assert n == plan["n"]
    n_pad, f_pad = plan["n_pad"], plan["f_pad"]
    x_pad = (jnp.zeros((n_pad, f_pad), jnp.float32).at[:n, :f].set(x)
             .astype(jnp.bfloat16))

    if plan["path"] == "fused":
        out = fused_simpleconv(plan["a"], plan["inv"], x_pad, num_layer,
                               vmem_limit=plan["vmem_limit"])
    else:
        h = x_pad
        for layer in range(num_layer):
            last = layer == num_layer - 1
            h = aggr_relu_tiled(plan["a"], plan["inv"], h,
                                tile_m=plan["tile_m"], tile_k=plan["tile_k"],
                                resident_h=plan["resident_h"],
                                out_dtype=jnp.float32 if last else jnp.bfloat16,
                                vmem_limit=plan["vmem_limit"])
        out = h
    return out[:n, :f]


# ------------------------------ model (glue) --------------------------------

class NonParametricPallas:
    """Pallas port of NonParametric (SimpleConv encoder, relu, norm=None)."""

    def __init__(self, in_dim, emb_dim, num_layer, drop_ratio=0, act="relu",
                 norm=None, concat=False):
        assert act == "relu" and norm is None and drop_ratio == 0 and not concat
        self.in_dim = in_dim
        self.emb_dim = emb_dim          # SimpleConv has no weights; API parity only
        self.num_layer = num_layer
        self._plans = {}                # (n, f, force_tiled) -> padded/cast graph plan

    def forward(self, x, edge_index=None, *, force_tiled=False):
        n, f = x.shape
        key = (int(n), int(f), bool(force_tiled))
        if edge_index is None:
            plan = self._plans.get(key)
            if plan is None:
                raise ValueError("no cached graph for this shape; pass edge_index once")
        else:
            counts, inv_deg = build_graph(edge_index, n)
            plan = make_plan(counts, inv_deg, n, f, force_tiled=force_tiled)
            self._plans[key] = plan     # cache the padded A / 1/deg across calls
        return simpleconv_forward(plan, x, self.num_layer)


# ----------------------------------- demo -----------------------------------

if __name__ == "__main__":
    N, IN_DIM, EMB_DIM, NUM_LAYER = 300, 8, 32, 2

    key = jax.random.PRNGKey(0)
    x = jax.random.normal(key, (N, IN_DIM), jnp.float32)

    # deterministic undirected ring graph (both edge directions)
    src = jnp.arange(N, dtype=jnp.int32)
    dst = (src + 1) % N
    edge_index = jnp.stack([jnp.concatenate([src, dst]),
                            jnp.concatenate([dst, src])], axis=0)   # [2, 2N]

    model = NonParametricPallas(IN_DIM, EMB_DIM, NUM_LAYER)

    out_fused = model.forward(x, edge_index)                      # fused, A resident in VMEM
    out_cached = model.forward(x, None)                           # reuses the cached graph plan
    out_tiled = model.forward(x, edge_index, force_tiled=True)    # tiled accumulator path
    jax.block_until_ready((out_fused, out_cached, out_tiled))

    # pure-JAX f32 reference of the module semantics
    counts_ref, inv_deg_ref = build_graph(edge_index, N)
    h_ref = x
    for _ in range(NUM_LAYER):
        h_ref = jnp.maximum((counts_ref @ h_ref) * inv_deg_ref[:, None], 0.0)

    assert out_fused.shape == (N, IN_DIM)
    assert out_tiled.shape == (N, IN_DIM)
    assert jnp.allclose(out_fused, h_ref, rtol=5e-2, atol=5e-2)
    assert jnp.allclose(out_cached, h_ref, rtol=5e-2, atol=5e-2)
    assert jnp.allclose(out_tiled, h_ref, rtol=5e-2, atol=5e-2)
    print("KERNEL_OK")
</pallas_src>

<mosaic_0001>
module attributes {stable_mosaic.version = 11 : i64} {
  func.func @_fused_layers_kernel(%arg0: i32, %arg1: memref<384x384xbf16, #tpu.memory_space<any>>, %arg2: memref<384x128xbf16, #tpu.memory_space<vmem>>, %arg3: memref<384x1xf32, #tpu.memory_space<vmem>>, %arg4: memref<384x128xf32, #tpu.memory_space<vmem>>, %arg5: memref<384x384xbf16, #tpu.memory_space<vmem>>, %arg6: memref<384x128xbf16, #tpu.memory_space<vmem>>) attributes {dimension_semantics = [#tpu.dimension_semantics<arbitrary>], iteration_bounds = array<i64: 2>, scalar_prefetch = 0 : i64, scratch_operands = 2 : i64, tpu.core_type = #tpu.core_type<tc>, window_params = [{}, {pipeline_mode = #tpu.pipeline_mode<synchronous>, transform_indices = @transform_1, window_bounds = array<i64: 384, 128>}, {pipeline_mode = #tpu.pipeline_mode<synchronous>, transform_indices = @transform_2, window_bounds = array<i64: 384, 1>}, {pipeline_mode = #tpu.pipeline_mode<synchronous>, transform_indices = @transform_3, window_bounds = array<i64: 384, 128>}]} {
    %c0_i32 = arith.constant 0 : i32
    %0 = arith.cmpi eq, %arg0, %c0_i32 : i32
    %1 = arith.extui %0 : i1 to i32
    %c0_i32_0 = arith.constant 0 : i32
    %2 = arith.cmpi ne, %1, %c0_i32_0 : i32
    scf.if %2 {
      "tpu.region"() ({
        %18 = tpu.sem_alloc : memref<!tpu.dma_semaphore, #tpu.memory_space<semaphore_mem>>
        tpu.enqueue_dma source(%arg1 : memref<384x384xbf16, #tpu.memory_space<any>>) target(%arg5 : memref<384x384xbf16, #tpu.memory_space<vmem>>) target_semaphore(%18 : memref<!tpu.dma_semaphore, #tpu.memory_space<semaphore_mem>>)
        tpu.wait_dma2 semaphore(%18 : memref<!tpu.dma_semaphore, #tpu.memory_space<semaphore_mem>>) src(%arg1 : memref<384x384xbf16, #tpu.memory_space<any>>) dst(%arg5 : memref<384x384xbf16, #tpu.memory_space<vmem>>)
        tpu.yield
      }) : () -> ()
      %c0_10 = arith.constant 0 : index
      %c0_11 = arith.constant 0 : index
      %16 = vector.load %arg2[%c0_10, %c0_11] : memref<384x128xbf16, #tpu.memory_space<vmem>>, vector<384x128xbf16>
      %c0_12 = arith.constant 0 : index
      %c0_13 = arith.constant 0 : index
      %17 = vector.load %arg6[%c0_12, %c0_13] : memref<384x128xbf16, #tpu.memory_space<vmem>>, vector<384x128xbf16>
      tpu.vector_store %arg6[%c0_12, %c0_13], %16 {strides = array<i32>} : memref<384x128xbf16, #tpu.memory_space<vmem>>, vector<384x128xbf16>,
    } else {
    }
    %c0 = arith.constant 0 : index
    %c0_1 = arith.constant 0 : index
    %3 = vector.load %arg5[%c0, %c0_1] : memref<384x384xbf16, #tpu.memory_space<vmem>>, vector<384x384xbf16>
    %c0_2 = arith.constant 0 : index
    %c0_3 = arith.constant 0 : index
    %4 = vector.load %arg6[%c0_2, %c0_3] : memref<384x128xbf16, #tpu.memory_space<vmem>>, vector<384x128xbf16>
    %cst = arith.constant dense<0.000000e+00> : vector<384x128xf32>
    %5 = tpu.matmul %3, %4, %cst {dimension_numbers = #tpu.dot_dimension_numbers<[1], [0], [0], [1], [0, 0, 1, 1], [], []>} : vector<384x384xbf16>, vector<384x128xbf16>, vector<384x128xf32> -> vector<384x128xf32>
    %c0_4 = arith.constant 0 : index
    %c0_5 = arith.constant 0 : index
    %6 = vector.load %arg3[%c0_4, %c0_5] : memref<384x1xf32, #tpu.memory_space<vmem>>, vector<384x1xf32>
    %7 = vector.broadcast %6 : vector<384x1xf32> to vector<384x128xf32>
    %8 = arith.mulf %5, %7 : vector<384x128xf32>
    %cst_6 = arith.constant 0.000000e+00 : f32
    %9 = vector.broadcast %cst_6 : f32 to vector<384x128xf32>
    %10 = arith.maximumf %8, %9 : vector<384x128xf32>
    %11 = arith.truncf %10 : vector<384x128xf32> to vector<384x128xbf16>
    %c0_7 = arith.constant 0 : index
    %c0_8 = arith.constant 0 : index
    %12 = vector.load %arg6[%c0_7, %c0_8] : memref<384x128xbf16, #tpu.memory_space<vmem>>, vector<384x128xbf16>
    tpu.vector_store %arg6[%c0_7, %c0_8], %11 {strides = array<i32>} : memref<384x128xbf16, #tpu.memory_space<vmem>>, vector<384x128xbf16>,
    %c1_i32 = arith.constant 1 : i32
    %13 = arith.cmpi eq, %arg0, %c1_i32 : i32
    %14 = arith.extui %13 : i1 to i32
    %c0_i32_9 = arith.constant 0 : i32
    %15 = arith.cmpi ne, %14, %c0_i32_9 : i32
    scf.if %15 {
      %c0_10 = arith.constant 0 : index
      %c0_11 = arith.constant 0 : index
      %16 = vector.load %arg4[%c0_10, %c0_11] : memref<384x128xf32, #tpu.memory_space<vmem>>, vector<384x128xf32>
      tpu.vector_store %arg4[%c0_10, %c0_11], %10 {strides = array<i32>} : memref<384x128xf32, #tpu.memory_space<vmem>>, vector<384x128xf32>,
    } else {
    }
    return
  }
  func.func @transform_1(%arg0: i32) -> (i32, i32) {
    %c0_i32 = arith.constant 0 : i32
    %c0_i32_0 = arith.constant 0 : i32
    %c0_i32_1 = arith.constant 0 : i32
    return %c0_i32, %c0_i32_0 : i32, i32
  }
  func.func @transform_2(%arg0: i32) -> (i32, i32) {
    %c0_i32 = arith.constant 0 : i32
    %c0_i32_0 = arith.constant 0 : i32
    %c0_i32_1 = arith.constant 0 : i32
    return %c0_i32, %c0_i32_0 : i32, i32
  }
  func.func @transform_3(%arg0: i32) -> (i32, i32) {
    %c0_i32 = arith.constant 0 : i32
    %c0_i32_0 = arith.constant 0 : i32
    %c0_i32_1 = arith.constant 0 : i32
    return %c0_i32, %c0_i32_0 : i32, i32
  }
}

</mosaic_0001>

<bundles_post_ra>
// kernel: tpu_custom_call.1
= control target key start
LH: loop header
LB: loop body
LE: loop exit
PB: predicated region body
PF: predicated region fallthrough
CT: control target
= control target key end

     0   :  { %8 = vsyncpa [#allocation5], 0  ;;  %s2757_s12 = smov 0   ;;  %s3526_s0 = inlined_call_operand.hbm [shape: bf16[384,384], index: 0, kind: input, shape index: {}]   ;;  %s3527_s1 = inlined_call_operand.vmem [shape: bf16[384,128], index: 1, kind: input, shape index: {}]   ;;  %s3528_s2 = inlined_call_operand.vmem [shape: f32[384,1], index: 2, kind: input, shape index: {}]   ;;  %s3529_s3 = inlined_call_operand.hbm [shape: f32[384,128], index: 3, kind: output, shape index: {}]  }
   0x1 LB: > { %s2763_s13 = sadd.s32 4294967295, %s2730_s12   ;;  %p2063_p0 = scmp.ge.s32.totalorder %s2730_s12, 1  ;;  %s2730_s12 = sphi %s2757_s12, %s14_s12  }
   0x2   : > { %p99_p1 = scmp.lt.s32.totalorder %s2730_s12, 3 }
   0x4   : > { %p100_p2 = pnand %p2063_p0, %p99_p1 }
   0x6   : > { %103 = sbr.rel (%p100_p2) target bundleno = 494 (0x1ee), region = 28 }
   0xb   : > { %p2064_p3 = scmp.ne.s32.totalorder %s2763_s13, 0 }
   0xd   : > { %115 = sbr.rel (%p2064_p3) target bundleno = 43 (0x2b), region = 32 }
  0x12   : > { %s2732_s14 = smov [#allocation2]  }
  0x13   : > { %s123_s15 = sshll.u32 %s2732_s14, 4  ;;  %s124_s15 = int_to_ptr.vmem [resolvable:$true] %s123_s15 }
  0x14   : > { %s2682_s16 = scalar_lea.vmem %s124_s15, 9216  ;;  %p2687_p5 = scmp.lt.s32.totalorder %s124_s15, %s124_s15 }
  0x15   : > { %p2683_p4 = scmp.ne.s32.totalorder %s124_s15, %s2682_s16  ;;  %p2688_p6 = scmp.lt.s32.totalorder %s2682_s16, %s2682_s16 }
  0x17   : > { %p2689_p7 = por %p2688_p6, %p2687_p5 }
  0x19   : > { %p2690_p8 = pnand %p2689_p7, %p2683_p4 }
  0x1b   : > { %2693 = shalt.err (!%p2690_p8)  }
  0x1c   : > { %126 = dma.hbm_to_vmem [thread:$0]  %s3526_s0, 9216, %s124_s15, [#allocation6] }
  0x1d   : > { %2722 = dma.done.wait [#allocation6], 9216 }
  0x1e   : > { %2723 = vsyncadd [#allocation6], 4294958080  ;;  %v131_v0 = vld [vmem:[%s3527_s1] sm:$0xff]   ;;  %v133_v1 = vld [vmem:[%s3527_s1 + $0x8] sm:$0xff]  }
  0x1f   : > { %v135_v2 = vld [vmem:[%s3527_s1 + $0x10] sm:$0xff]   ;;  %179 = vst [vmem:[#allocation3] sm:$0xff] %v131_v0   ;;  %181 = vst [vmem:[#allocation3 + $0x8] sm:$0xff] %v133_v1   ;;  %v137_v3 = vld [vmem:[%s3527_s1 + $0x18] sm:$0xff]  }
  0x20   : > { %183 = vst [vmem:[#allocation3 + $0x10] sm:$0xff] %v135_v2   ;;  %v139_v4 = vld [vmem:[%s3527_s1 + $0x20] sm:$0xff]   ;;  %v141_v5 = vld [vmem:[%s3527_s1 + $0x28] sm:$0xff]   ;;  %185 = vst [vmem:[#allocation3 + $0x18] sm:$0xff] %v137_v3  }
  0x21   : > { %187 = vst [vmem:[#allocation3 + $0x20] sm:$0xff] %v139_v4   ;;  %189 = vst [vmem:[#allocation3 + $0x28] sm:$0xff] %v141_v5   ;;  %v143_v6 = vld [vmem:[%s3527_s1 + $0x30] sm:$0xff]   ;;  %v145_v7 = vld [vmem:[%s3527_s1 + $0x38] sm:$0xff]  }
  0x22   : > { %v147_v8 = vld [vmem:[%s3527_s1 + $0x40] sm:$0xff]   ;;  %191 = vst [vmem:[#allocation3 + $0x30] sm:$0xff] %v143_v6   ;;  %193 = vst [vmem:[#allocation3 + $0x38] sm:$0xff] %v145_v7   ;;  %v149_v9 = vld [vmem:[%s3527_s1 + $0x48] sm:$0xff]  }
  0x23   : > { %195 = vst [vmem:[#allocation3 + $0x40] sm:$0xff] %v147_v8   ;;  %v151_v10 = vld [vmem:[%s3527_s1 + $0x50] sm:$0xff]   ;;  %v153_v11 = vld [vmem:[%s3527_s1 + $0x58] sm:$0xff]   ;;  %197 = vst [vmem:[#allocation3 + $0x48] sm:$0xff] %v149_v9  }
  0x24   : > { %199 = vst [vmem:[#allocation3 + $0x50] sm:$0xff] %v151_v10   ;;  %201 = vst [vmem:[#allocation3 + $0x58] sm:$0xff] %v153_v11   ;;  %v155_v12 = vld [vmem:[%s3527_s1 + $0x60] sm:$0xff]   ;;  %v157_v13 = vld [vmem:[%s3527_s1 + $0x68] sm:$0xff]  }
  0x25   : > { %v159_v14 = vld [vmem:[%s3527_s1 + $0x70] sm:$0xff]   ;;  %203 = vst [vmem:[#allocation3 + $0x60] sm:$0xff] %v155_v12   ;;  %205 = vst [vmem:[#allocation3 + $0x68] sm:$0xff] %v157_v13   ;;  %v161_v15 = vld [vmem:[%s3527_s1 + $0x78] sm:$0xff]  }
  0x26   : > { %207 = vst [vmem:[#allocation3 + $0x70] sm:$0xff] %v159_v14   ;;  %v163_v16 = vld [vmem:[%s3527_s1 + $0x80] sm:$0xff]   ;;  %v165_v17 = vld [vmem:[%s3527_s1 + $0x88] sm:$0xff]   ;;  %209 = vst [vmem:[#allocation3 + $0x78] sm:$0xff] %v161_v15  }
  0x27   : > { %211 = vst [vmem:[#allocation3 + $0x80] sm:$0xff] %v163_v16   ;;  %213 = vst [vmem:[#allocation3 + $0x88] sm:$0xff] %v165_v17   ;;  %v167_v18 = vld [vmem:[%s3527_s1 + $0x90] sm:$0xff]   ;;  %v169_v19 = vld [vmem:[%s3527_s1 + $0x98] sm:$0xff]  }
  0x28   : > { %v171_v20 = vld [vmem:[%s3527_s1 + $0xa0] sm:$0xff]   ;;  %215 = vst [vmem:[#allocation3 + $0x90] sm:$0xff] %v167_v18   ;;  %217 = vst [vmem:[#allocation3 + $0x98] sm:$0xff] %v169_v19   ;;  %v173_v21 = vld [vmem:[%s3527_s1 + $0xa8] sm:$0xff]  }
  0x29   : > { %219 = vst [vmem:[#allocation3 + $0xa0] sm:$0xff] %v171_v20   ;;  %v175_v22 = vld [vmem:[%s3527_s1 + $0xb0] sm:$0xff]   ;;  %v177_v23 = vld [vmem:[%s3527_s1 + $0xb8] sm:$0xff]   ;;  %221 = vst [vmem:[#allocation3 + $0xa8] sm:$0xff] %v173_v21  }
  0x2a   : > { %223 = vst [vmem:[#allocation3 + $0xb0] sm:$0xff] %v175_v22   ;;  %225 = vst [vmem:[#allocation3 + $0xb8] sm:$0xff] %v177_v23  }
  0x2b PF: > { %v2554_v24 = vld [vmem:[#allocation3 + $0x38] sm:$0xff]   ;;  %v2733_v25 = vmov 0   ;;  %v2555_v26 = vld [vmem:[#allocation3 + $0x30] sm:$0xff]   ;;  %v2556_v27 = vld [vmem:[#allocation3 + $0x28] sm:$0xff]   ;;  %p2209_p9 = scmp.ne.s32.totalorder %s2763_s13, 1 }
  0x2c   : > { %899 = vmatprep.subr.bf16.mxu0 %v2733_v25  ;;  %2501 = vmatprep.subr.bf16.mxu1 %v2733_v25  ;;  %v2557_v28 = vld [vmem:[#allocation3 + $0x20] sm:$0xff]   ;;  %v2558_v29 = vld [vmem:[#allocation3 + $0x18] sm:$0xff]   ;;  %v2559_v31 = vld [vmem:[#allocation3 + $0x10] sm:$0xff]  }
  0x2d   : > { %900 = vmatpush1.bf16.msra.mxu0 %v2554_v24  ;;  %2517 = vmatpush1.bf16.msra.mxu1 %v2554_v24  ;;  %v2572_v30 = vld [vmem:[#allocation2 + $0x4] ss:$12 sps:$4 sm:$0xff]   ;;  %v2575_v32 = vld [vmem:[#allocation2 + $0x1b4] ss:$12 sps:$4 sm:$0xff]   ;;  %v2560_v33 = vld [vmem:[#allocation3 + $0x8] sm:$0xff]  }
  0x2e   : > { %901 = vmatprep.subr.bf16.mxu0 %v2733_v25  ;;  %2502 = vmatprep.subr.bf16.mxu1 %v2733_v25  ;;  %v2561_v34 = vld [vmem:[#allocation3] sm:$0xff]   ;;  %v2562_v35 = vld [vmem:[#allocation3 + $0x78] sm:$0xff]   ;;  %v1351_v36 = vld [vmem:[%s3528_s2 + $0x10] sm:$0xff] }
  0x2f   : > { %2553 = vset.pattern.permute.xlu1 %v2733_v25  ;;  %2552 = vset.pattern.permute.xlu0 %v2733_v25  ;;  %v1349_v37 = vld [vmem:[%s3528_s2] sm:$0xff]  ;;  %v2563_v38 = vld [vmem:[#allocation3 + $0x70] sm:$0xff]   ;;  %v1352_v39 = vld [vmem:[%s3528_s2 + $0x18] sm:$0xff] }
  0x30   : > { %931 = vmatprep.mubr.bf16.mxu0 %v2572_v30  ;;  %1075 = vmatprep.mubr.bf16.mxu1 %v2575_v32  ;;  %v1350_v40 = vld [vmem:[%s3528_s2 + $0x8] sm:$0xff]  ;;  %v1353_v43 = vld [vmem:[%s3528_s2 + $0x20] sm:$0xff]  ;;  %v1356_v45 = vld [vmem:[%s3528_s2 + $0x38] sm:$0xff] }
  0x31   : > { %902 = vmatpush1.bf16.msra.mxu0 %v2555_v26  ;;  %2518 = vmatpush1.bf16.msra.mxu1 %v2555_v26  ;;  %v2564_v41 = vld [vmem:[#allocation3 + $0x68] sm:$0xff]   ;;  %v2565_v44 = vld [vmem:[#allocation3 + $0x60] sm:$0xff]   ;;  %v1355_v46 = vld [vmem:[%s3528_s2 + $0x30] sm:$0xff] }
  0x32   : > { %903 = vmatprep.subr.bf16.mxu0 %v2733_v25  ;;  %2503 = vmatprep.subr.bf16.mxu1 %v2733_v25  ;;  %v1354_v42 = vld [vmem:[%s3528_s2 + $0x28] sm:$0xff]  ;;  %v2566_v47 = vld [vmem:[#allocation3 + $0x58] sm:$0xff]   ;;  %v1357_v49 = vld [vmem:[%s3528_s2 + $0x40] sm:$0xff] }
  0x33   : > { %1409 = vperm.xlu1 %2553, %v1351_v36   ;;  %1399 = vperm.xlu0 %2552, %v1349_v37   ;;  %v1358_v48 = vld [vmem:[%s3528_s2 + $0x48] sm:$0xff]  ;;  %v2567_v50 = vld [vmem:[#allocation3 + $0x50] sm:$0xff]   ;;  %v1360_v51 = vld [vmem:[%s3528_s2 + $0x58] sm:$0xff] }
  0x34   : > { %v1359_v52 = vld [vmem:[%s3528_s2 + $0x50] sm:$0xff]  ;;  %v2568_v53 = vld [vmem:[#allocation3 + $0x48] sm:$0xff]   ;;  %v1361_v55 = vld [vmem:[%s3528_s2 + $0x60] sm:$0xff] }
  0x35   : > { %904 = vmatpush1.bf16.msra.mxu0 %v2556_v27  ;;  %2519 = vmatpush1.bf16.msra.mxu1 %v2556_v27  ;;  %v1362_v54 = vld [vmem:[%s3528_s2 + $0x68] sm:$0xff]  ;;  %v2569_v56 = vld [vmem:[#allocation3 + $0x40] sm:$0xff]   ;;  %v1364_v57 = vld [vmem:[%s3528_s2 + $0x78] sm:$0xff] }
  0x36   : > { %905 = vmatprep.subr.bf16.mxu0 %v2733_v25  ;;  %2504 = vmatprep.subr.bf16.mxu1 %v2733_v25  ;;  %v1363_v58 = vld [vmem:[%s3528_s2 + $0x70] sm:$0xff]  ;;  %v2576_v59 = vld [vmem:[#allocation3 + $0xb8] sm:$0xff]   ;;  %v2570_v60 = vld [vmem:[#allocation2] ss:$12 sps:$4 sm:$0xff]  }
  0x37   : > { %1414 = vperm.xlu1 %2553, %v1352_v39   ;;  %1404 = vperm.xlu0 %2552, %v1350_v40   ;;  %v2573_v61 = vld [vmem:[#allocation2 + $0x1b0] ss:$12 sps:$4 sm:$0xff]   ;;  %v2580_v0 = vld [vmem:[#allocation2 + $0x1cc] ss:$12 sps:$4 sm:$0xff]   ;;  %v1365_v2 = vld [vmem:[%s3528_s2 + $0x80] sm:$0xff] }
  0x38   : > { %v2577_v62 = vld [vmem:[#allocation3 + $0xb0] sm:$0xff]   ;;  %v2578_v63 = vld [vmem:[#allocation2 + $0x1c] ss:$12 sps:$4 sm:$0xff]   ;;  %v2582_v3 = vld [vmem:[#allocation2 + $0x18] ss:$12 sps:$4 sm:$0xff]  }
  0x39   : > { %906 = vmatpush1.bf16.msra.mxu0 %v2557_v28  ;;  %2520 = vmatpush1.bf16.msra.mxu1 %v2557_v28  ;;  %v1366_v1 = vld [vmem:[%s3528_s2 + $0x88] sm:$0xff]  ;;  %v1368_v6 = vld [vmem:[%s3528_s2 + $0x98] sm:$0xff]  ;;  %v1367_v7 = vld [vmem:[%s3528_s2 + $0x90] sm:$0xff] }
  0x3a   : > { %907 = vmatprep.subr.bf16.mxu0 %v2733_v25  ;;  %2505 = vmatprep.subr.bf16.mxu1 %v2733_v25  ;;  %v2584_v4 = vld [vmem:[#allocation3 + $0xa8] sm:$0xff]   ;;  %v2585_v8 = vld [vmem:[#allocation2 + $0x34] ss:$12 sps:$4 sm:$0xff]   ;;  %v2587_v9 = vld [vmem:[#allocation2 + $0x1e4] ss:$12 sps:$4 sm:$0xff]  }
  0x3b   : > { %1424 = vperm.xlu1 %2553, %v1354_v42   ;;  %1419 = vperm.xlu0 %2552, %v1353_v43   ;;  %v2583_v5 = vld [vmem:[#allocation2 + $0x1c8] ss:$12 sps:$4 sm:$0xff]   ;;  %v2591_v10 = vld [vmem:[#allocation3 + $0xa0] sm:$0xff]   ;;  %v2589_v13 = vld [vmem:[#allocation2 + $0x30] ss:$12 sps:$4 sm:$0xff]  }
  0x3c   : > { %v1370_v11 = vld [vmem:[%s3528_s2 + $0xa8] sm:$0xff]  ;;  %v1369_v12 = vld [vmem:[%s3528_s2 + $0xa0] sm:$0xff]  ;;  %v2598_v15 = vld [vmem:[#allocation3 + $0x98] sm:$0xff]  }
  0x3d   : > { %908 = vmatpush1.bf16.msra.mxu0 %v2558_v29  ;;  %2521 = vmatpush1.bf16.msra.mxu1 %v2558_v29  ;;  %v2590_v14 = vld [vmem:[#allocation2 + $0x1e0] ss:$12 sps:$4 sm:$0xff]   ;;  %v1372_v17 = vld [vmem:[%s3528_s2 + $0xb8] sm:$0xff]  ;;  %v1371_v18 = vld [vmem:[%s3528_s2 + $0xb0] sm:$0xff] }
  0x3e   : > { %909 = vmatprep.subr.bf16.mxu0 %v2733_v25  ;;  %2506 = vmatprep.subr.bf16.mxu1 %v2733_v25  ;;  %v2592_v16 = vld [vmem:[#allocation2 + $0x4c] ss:$12 sps:$4 sm:$0xff]   ;;  %v2594_v19 = vld [vmem:[#allocation2 + $0x1fc] ss:$12 sps:$4 sm:$0xff]   ;;  %v2599_v20 = vld [vmem:[#allocation3 + $0x90] sm:$0xff]  }
  0x3f   : > { %1434 = vperm.xlu1 %2553, %v1356_v45   ;;  %1429 = vperm.xlu0 %2552, %v1355_v46   ;;  %v1374_v21 = vld [vmem:[%s3528_s2 + $0xc8] sm:$0xff]  ;;  %v1373_v22 = vld [vmem:[%s3528_s2 + $0xc0] sm:$0xff]  ;;  %v1376_v27 = vld [vmem:[%s3528_s2 + $0xd8] sm:$0xff] }
  0x40   : > { %v2596_v23 = vld [vmem:[#allocation2 + $0x48] ss:$12 sps:$4 sm:$0xff]   ;;  %v2597_v24 = vld [vmem:[#allocation2 + $0x1f8] ss:$12 sps:$4 sm:$0xff]   ;;  %v2604_v32 = vld [vmem:[#allocation2 + $0x60] ss:$12 sps:$4 sm:$0xff]  }
  0x41   : > { %910 = vmatpush1.bf16.msra.mxu0 %v2559_v31  ;;  %2522 = vmatpush1.bf16.msra.mxu1 %v2559_v31  ;;  %v2606_v26 = vld [vmem:[#allocation3 + $0x88] sm:$0xff]   ;;  %v2602_v28 = vld [vmem:[#allocation2 + $0x214] ss:$12 sps:$4 sm:$0xff]   ;;  %v1384_v43 = vld [vmem:[%s3528_s2 + $0x118] sm:$0xff] }
  0x42   : > { %911 = vmatprep.subr.bf16.mxu0 %v2733_v25  ;;  %2507 = vmatprep.subr.bf16.mxu1 %v2733_v25  ;;  %v2613_v29 = vld [vmem:[#allocation3 + $0x80] sm:$0xff]   ;;  %v1375_v30 = vld [vmem:[%s3528_s2 + $0xd0] sm:$0xff]  ;;  %v1378_v31 = vld [vmem:[%s3528_s2 + $0xe8] sm:$0xff] }
  0x43   : > { %1444 = vperm.xlu1 %2553, %v1358_v48   ;;  %1439 = vperm.xlu0 %2552, %v1357_v49   ;;  %v2607_v36 = vld [vmem:[#allocation2 + $0x7c] ss:$12 sps:$4 sm:$0xff]   ;;  %v2609_v37 = vld [vmem:[#allocation2 + $0x22c] ss:$12 sps:$4 sm:$0xff]   ;;  %v1381_v40 = vld [vmem:[%s3528_s2 + $0x100] sm:$0xff] }
  0x44   : > { %v1382_v39 = vld [vmem:[%s3528_s2 + $0x108] sm:$0xff]  ;;  %v1383_v46 = vld [vmem:[%s3528_s2 + $0x110] sm:$0xff]  ;;  %v1385_v48 = vld [vmem:[%s3528_s2 + $0x120] sm:$0xff] }
  0x45   : > { %912 = vmatpush1.bf16.msra.mxu0 %v2560_v33  ;;  %2523 = vmatpush1.bf16.msra.mxu1 %v2560_v33  ;;  %v2605_v33 = vld [vmem:[#allocation2 + $0x210] ss:$12 sps:$4 sm:$0xff]   ;;  %v2612_v42 = vld [vmem:[#allocation2 + $0x228] ss:$12 sps:$4 sm:$0xff]  }
  0x46   : > { %913 = vmatprep.subr.bf16.mxu0 %v2733_v25  ;;  %2508 = vmatprep.subr.bf16.mxu1 %v2733_v25  ;;  %v2616_v45 = vld [vmem:[#allocation2 + $0x8] ss:$12 sps:$4 sm:$0xff]   ;;  %v2617_v49 = vld [vmem:[#allocation2 + $0x90] ss:$12 sps:$4 sm:$0xff]  }
  0x47   : > { %1454 = vperm.xlu1 %2553, %v1360_v51   ;;  %1449 = vperm.xlu0 %2552, %v1359_v52   ;;  %v1388_v51 = vld [vmem:[%s3528_s2 + $0x138] sm:$0xff] }
  0x48   : > { %v2619_v52 = vld [vmem:[#allocation2 + $0xac] ss:$12 sps:$4 sm:$0xff]  }
  0x49   : > { %914 = vmatpush1.bf16.msra.mxu0 %v2561_v34  ;;  %2524 = vmatpush1.bf16.msra.mxu1 %v2561_v34  ;;  %v1377_v34 = vld [vmem:[%s3528_s2 + $0xe0] sm:$0xff] }
  0x4a   : > { %915 = vmatprep.subr.bf16.mxu0 %v2733_v25  ;;  %2509 = vmatprep.subr.bf16.mxu1 %v2733_v25 }
  0x4b   : > { %1464 = vperm.xlu1 %2553, %v1362_v54   ;;  %1459 = vperm.xlu0 %2552, %v1361_v55   ;;  %v1387_v54 = vld [vmem:[%s3528_s2 + $0x130] sm:$0xff]  ;;  %v1390_v55 = vld [vmem:[%s3528_s2 + $0x148] sm:$0xff] }
  0x4d   : > { %916 = vmatpush2.bf16.msra.mxu0 %v2562_v35  ;;  %2525 = vmatpush2.bf16.msra.mxu1 %v2562_v35  ;;  %v1380_v35 = vld [vmem:[%s3528_s2 + $0xf8] sm:$0xff] }
  0x4e   : > { %917 = vmatprep.subr.bf16.mxu0 %v2733_v25  ;;  %2510 = vmatprep.subr.bf16.mxu1 %v2733_v25 }
  0x4f   : > { %1474 = vperm.xlu1 %2553, %v1364_v57   ;;  %1469 = vperm.xlu0 %2552, %v1363_v58   ;;  %v2622_v57 = vld [vmem:[#allocation2 + $0xa8] ss:$12 sps:$4 sm:$0xff]   ;;  %v2623_v58 = vld [vmem:[#allocation2 + $0x50] ss:$12 sps:$4 sm:$0xff]  }
  0x51   : > { %918 = vmatpush2.bf16.msra.mxu0 %v2563_v38  ;;  %2526 = vmatpush2.bf16.msra.mxu1 %v2563_v38  ;;  %v1379_v38 = vld [vmem:[%s3528_s2 + $0xf0] sm:$0xff] }
  0x52   : > { %919 = vmatprep.subr.bf16.mxu0 %v2733_v25  ;;  %2511 = vmatprep.subr.bf16.mxu1 %v2733_v25 }
  0x53   : > { %1484 = vperm.xlu1 %2553, %v1366_v1   ;;  %1479 = vperm.xlu0 %2552, %v1365_v2   ;;  %v2627_v1 = vld [vmem:[#allocation2 + $0xc0] ss:$12 sps:$4 sm:$0xff]  }
  0x54   : > { %v2628_v2 = vld [vmem:[#allocation2 + $0x80] ss:$12 sps:$4 sm:$0xff]  }
  0x55   : > { %920 = vmatpush2.bf16.msra.mxu0 %v2564_v41  ;;  %2527 = vmatpush2.bf16.msra.mxu1 %v2564_v41  ;;  %v2611_v41 = vld [vmem:[#allocation2 + $0x78] ss:$12 sps:$4 sm:$0xff]  }
  0x56   : > { %921 = vmatprep.subr.bf16.mxu0 %v2733_v25  ;;  %2512 = vmatprep.subr.bf16.mxu1 %v2733_v25 }
  0x57   : > { %1494 = vperm.xlu1 %2553, %v1368_v6   ;;  %1489 = vperm.xlu0 %2552, %v1367_v7   ;;  %v1395_v6 = vld [vmem:[%s3528_s2 + $0x170] sm:$0xff]  ;;  %v2632_v7 = vld [vmem:[#allocation2 + $0xd8] ss:$12 sps:$4 sm:$0xff]  }
  0x59   : > { %922 = vmatpush2.bf16.msra.mxu0 %v2565_v44  ;;  %2528 = vmatpush2.bf16.msra.mxu1 %v2565_v44  ;;  %v2614_v44 = vld [vmem:[#allocation2 + $0x94] ss:$12 sps:$4 sm:$0xff]  }
  0x5a   : > { %923 = vmatprep.subr.bf16.mxu0 %v2733_v25  ;;  %2513 = vmatprep.subr.bf16.mxu1 %v2733_v25 }
  0x5b   : > { %1504 = vperm.xlu1 %2553, %v1370_v11   ;;  %1499 = vperm.xlu0 %2552, %v1369_v12   ;;  %v2637_v11 = vld [vmem:[#allocation2 + $0xf0] ss:$12 sps:$4 sm:$0xff]   ;;  %v2638_v12 = vld [vmem:[#allocation2 + $0xe0] ss:$12 sps:$4 sm:$0xff]  }
  0x5d   : > { %924 = vmatpush2.bf16.msra.mxu0 %v2566_v47  ;;  %2529 = vmatpush2.bf16.msra.mxu1 %v2566_v47  ;;  %v1386_v47 = vld [vmem:[%s3528_s2 + $0x128] sm:$0xff] }
  0x5e   : > { %925 = vmatprep.subr.bf16.mxu0 %v2733_v25  ;;  %2514 = vmatprep.subr.bf16.mxu1 %v2733_v25 }
  0x5f   : > { %1514 = vperm.xlu1 %2553, %v1372_v17   ;;  %1509 = vperm.xlu0 %2552, %v1371_v18   ;;  %v2644_v17 = vld [vmem:[#allocation2 + $0x124] ss:$12 sps:$4 sm:$0xff]   ;;  %v2646_v18 = vld [vmem:[#allocation2 + $0x128] ss:$12 sps:$4 sm:$0xff]  }
  0x61   : > { %926 = vmatpush2.bf16.msra.mxu0 %v2567_v50  ;;  %2530 = vmatpush2.bf16.msra.mxu1 %v2567_v50  ;;  %v2618_v50 = vld [vmem:[#allocation2 + $0x20] ss:$12 sps:$4 sm:$0xff]  }
  0x62   : > { %927 = vmatprep.subr.bf16.mxu0 %v2733_v25  ;;  %2515 = vmatprep.subr.bf16.mxu1 %v2733_v25 }
  0x63   : > { %1524 = vperm.xlu1 %2553, %v1374_v21   ;;  %1519 = vperm.xlu0 %2552, %v1373_v22   ;;  %v2649_v21 = vld [vmem:[#allocation2 + $0x13c] ss:$12 sps:$4 sm:$0xff]   ;;  %v2651_v22 = vld [vmem:[#allocation2 + $0x158] ss:$12 sps:$4 sm:$0xff]  }
  0x65   : > { %928 = vmatpush2.bf16.msra.mxu0 %v2568_v53  ;;  %2531 = vmatpush2.bf16.msra.mxu1 %v2568_v53  ;;  %v2621_v53 = vld [vmem:[#allocation2 + $0x38] ss:$12 sps:$4 sm:$0xff]  }
  0x66   : > { %929 = vmatprep.subr.bf16.mxu0 %v2733_v25  ;;  %2516 = vmatprep.subr.bf16.mxu1 %v2733_v25  ;;  %v2600_v25 = vld [vmem:[#allocation2 + $0x64] ss:$12 sps:$4 sm:$0xff]  }
  0x67   : > { %1534 = vperm.xlu1 %2553, %v1376_v27   ;;  %1529 = vperm.xlu0 %2552, %v1375_v30   ;;  %v2657_v27 = vld [vmem:[#allocation2 + $0x150] ss:$12 sps:$4 sm:$0xff]   ;;  %v2661_v30 = vld [vmem:[#allocation2 + $0x1b8] ss:$12 sps:$4 sm:$0xff]  }
  0x69   : > { %930 = vmatpush2.bf16.msra.mxu0 %v2569_v56  ;;  %2532 = vmatpush2.bf16.msra.mxu1 %v2569_v56  ;;  %v1389_v56 = vld [vmem:[%s3528_s2 + $0x140] sm:$0xff] }
  0x6a   : > { %2437 = vmatprep.subr.bf16.mxu1 %v2576_v59 }
  0x6b   : > { %1544 = vperm.xlu1 %2553, %v1378_v31   ;;  %1539 = vperm.xlu0 %2552, %v1377_v34   ;;  %v2662_v31 = vld [vmem:[#allocation2 + $0x168] ss:$12 sps:$4 sm:$0xff]  }
  0x6c   : > { %932 = vmatmul.mubr.bf16.vlgmr.msra.gmra.mxu0 %v2570_v60  ;;  %1076 = vmatmul.mubr.bf16.vlgmr.msra.gmra.mxu1 %v2573_v61  ;;  %v2624_v60 = vld [vmem:[#allocation2 + $0xc4] ss:$12 sps:$4 sm:$0xff]   ;;  %v2626_v61 = vld [vmem:[#allocation2 + $0x68] ss:$12 sps:$4 sm:$0xff]  }
  0x6d   : > { %2438 = vmatpush3.bf16.msra.mxu1 %v2576_v59  ;;  %939 = vmatprep.mubr.bf16.mxu0 %v2578_v63  ;;  %v1392_v59 = vld [vmem:[%s3528_s2 + $0x158] sm:$0xff]  ;;  %v1394_v63 = vld [vmem:[%s3528_s2 + $0x168] sm:$0xff] }
  0x6e   : > { %2439 = vmatprep.subr.bf16.mxu1 %v2577_v62  ;;  %1083 = vmatprep.mubr.bf16.mxu1 %v2580_v0  ;;  %v1393_v0 = vld [vmem:[%s3528_s2 + $0x160] sm:$0xff]  ;;  %v2666_v34 = vld [vmem:[#allocation2 + $0x1e8] ss:$12 sps:$4 sm:$0xff]  }
  0x6f   : > { %1554 = vperm.xlu1 %2553, %v1380_v35   ;;  %1549 = vperm.xlu0 %2552, %v1379_v38   ;;  %v2667_v35 = vld [vmem:[#allocation2 + $0x180] ss:$12 sps:$4 sm:$0xff]   ;;  %v2671_v38 = vld [vmem:[#allocation2 + $0x218] ss:$12 sps:$4 sm:$0xff]  }
  0x71   : > { %2440 = vmatpush3.bf16.msra.mxu1 %v2577_v62  ;;  %v1391_v62 = vld [vmem:[%s3528_s2 + $0x150] sm:$0xff] }
  0x72   : > { %2441 = vmatprep.subr.bf16.mxu1 %v2584_v4 }
  0x73   : > { %1564 = vperm.xlu1 %2553, %v1382_v39   ;;  %1559 = vperm.xlu0 %2552, %v1381_v40   ;;  %v2672_v39 = vld [vmem:[#allocation2 + $0x198] ss:$12 sps:$4 sm:$0xff]   ;;  %v2673_v40 = vld [vmem:[#allocation2 + $0x230] ss:$12 sps:$4 sm:$0xff]  }
  0x74   : > { %940 = vmatmul.mubr.bf16.gmra.mxu0 %v2582_v3  ;;  %1084 = vmatmul.mubr.bf16.gmra.mxu1 %v2583_v5  ;;  %v1396_v3 = vld [vmem:[%s3528_s2 + $0x178] sm:$0xff] }
  0x75   : > { %2442 = vmatpush3.bf16.msra.mxu1 %v2584_v4  ;;  %947 = vmatprep.mubr.bf16.mxu0 %v2585_v8  ;;  %v2629_v4 = vld [vmem:[#allocation2 + $0xdc] ss:$12 sps:$4 sm:$0xff]   ;;  %v2631_v5 = vld [vmem:[#allocation2 + $0x98] ss:$12 sps:$4 sm:$0xff]  }
  0x76   : > { %1091 = vmatprep.mubr.bf16.mxu1 %v2587_v9  ;;  %2443 = vmatprep.subr.bf16.mxu1 %v2591_v10  ;;  %v2633_v8 = vld [vmem:[#allocation2 + $0xb0] ss:$12 sps:$4 sm:$0xff]   ;;  %v2634_v9 = vld [vmem:[#allocation2 + $0xf4] ss:$12 sps:$4 sm:$0xff]  }
  0x77   : > { %1574 = vperm.xlu1 %2553, %v1384_v43   ;;  %1569 = vperm.xlu0 %2552, %v1383_v46  }
  0x79   : > { %2444 = vmatpush3.bf16.msra.mxu1 %v2591_v10  ;;  %v2636_v10 = vld [vmem:[#allocation2 + $0xc8] ss:$12 sps:$4 sm:$0xff]  }
  0x7a   : > { %2445 = vmatprep.subr.bf16.mxu1 %v2598_v15 }
  0x7b   : > { %1584 = vperm.xlu1 %2553, %v1386_v47   ;;  %1579 = vperm.xlu0 %2552, %v1385_v48  }
  0x7c   : > { %948 = vmatmul.mubr.bf16.gmra.mxu0 %v2589_v13  ;;  %1092 = vmatmul.mubr.bf16.gmra.mxu1 %v2590_v14  ;;  %v2639_v13 = vld [vmem:[#allocation2 + $0x10c] ss:$12 sps:$4 sm:$0xff]  }
  0x7d   : > { %955 = vmatprep.mubr.bf16.mxu0 %v2592_v16  ;;  %1099 = vmatprep.mubr.bf16.mxu1 %v2594_v19  ;;  %v2641_v14 = vld [vmem:[#allocation2 + $0xf8] ss:$12 sps:$4 sm:$0xff]   ;;  %v2643_v16 = vld [vmem:[#allocation2 + $0x110] ss:$12 sps:$4 sm:$0xff]   ;;  %v2647_v19 = vld [vmem:[#allocation2 + $0x120] ss:$12 sps:$4 sm:$0xff]  }
  0x7e   : > { %2446 = vmatpush3.bf16.msra.mxu1 %v2598_v15  ;;  %v2642_v15 = vld [vmem:[#allocation2 + $0x108] ss:$12 sps:$4 sm:$0xff]  }
  0x7f   : > { %2447 = vmatprep.subr.bf16.mxu1 %v2599_v20  ;;  %1594 = vperm.xlu1 %2553, %v1388_v51  }
  0x80   : > { %1589 = vperm.xlu0 %2552, %v1387_v54  }
  0x82   : > { %2448 = vmatpush3.bf16.msra.mxu1 %v2599_v20  ;;  %v2648_v20 = vld [vmem:[#allocation2 + $0x140] ss:$12 sps:$4 sm:$0xff]  }
  0x83   : > { %2449 = vmatprep.subr.bf16.mxu1 %v2606_v26  ;;  %1604 = vperm.xlu1 %2553, %v1390_v55  }
  0x84   : > { %956 = vmatmul.mubr.bf16.gmra.mxu0 %v2596_v23  ;;  %1100 = vmatmul.mubr.bf16.gmra.mxu1 %v2597_v24  ;;  %v2652_v23 = vld [vmem:[#allocation2 + $0x138] ss:$12 sps:$4 sm:$0xff]   ;;  %v2653_v24 = vld [vmem:[#allocation2 + $0x170] ss:$12 sps:$4 sm:$0xff]  }
  0x85   : > { %963 = vmatprep.mubr.bf16.mxu0 %v2600_v25  ;;  %1107 = vmatprep.mubr.bf16.mxu1 %v2602_v28  ;;  %v2654_v25 = vld [vmem:[#allocation2 + $0x154] ss:$12 sps:$4 sm:$0xff]  }
  0x86   : > { %2450 = vmatpush3.bf16.msra.mxu1 %v2606_v26  ;;  %1599 = vperm.xlu0 %2552, %v1389_v56   ;;  %v2656_v26 = vld [vmem:[#allocation2 + $0x188] ss:$12 sps:$4 sm:$0xff]   ;;  %v2658_v28 = vld [vmem:[#allocation2 + $0x1a0] ss:$12 sps:$4 sm:$0xff]  }
  0x87   : > { %2451 = vmatprep.subr.bf16.mxu1 %v2613_v29  ;;  %1614 = vperm.xlu1 %2553, %v1392_v59  }
  0x8a   : > { %2452 = vmatpush3.bf16.msra.mxu1 %v2613_v29  ;;  %1609 = vperm.xlu0 %2552, %v1391_v62   ;;  %v2659_v29 = vld [vmem:[#allocation2 + $0x16c] ss:$12 sps:$4 sm:$0xff]  }
  0x8b   : > { %1624 = vperm.xlu1 %2553, %v1394_v63  }
  0x8c   : > { %964 = vmatmul.mubr.bf16.gmra.mxu0 %v2604_v32  ;;  %1108 = vmatmul.mubr.bf16.gmra.mxu1 %v2605_v33  ;;  %v2663_v32 = vld [vmem:[#allocation2 + $0x1d0] ss:$12 sps:$4 sm:$0xff]  }
  0x8d   : > { %971 = vmatprep.mubr.bf16.mxu0 %v2607_v36  ;;  %1115 = vmatprep.mubr.bf16.mxu1 %v2609_v37  ;;  %v2664_v33 = vld [vmem:[#allocation2 + $0x184] ss:$12 sps:$4 sm:$0xff]   ;;  %v2668_v36 = vld [vmem:[#allocation2 + $0x200] ss:$12 sps:$4 sm:$0xff]   ;;  %v2669_v37 = vld [vmem:[#allocation2 + $0x19c] ss:$12 sps:$4 sm:$0xff]  }
  0x8e   : > { %1619 = vperm.xlu0 %2552, %v1393_v0  }
  0x8f   : > { %1634 = vperm.xlu1 %2553, %v1396_v3  }
  0x92   : > { %1629 = vperm.xlu0 %2552, %v1395_v6  }
  0x94   : > { %972 = vmatmul.mubr.bf16.gmra.mxu0 %v2611_v41  ;;  %1116 = vmatmul.mubr.bf16.gmra.mxu1 %v2612_v42 }
  0x95   : > { %979 = vmatprep.mubr.bf16.mxu0 %v2614_v44  ;;  %2453 = vmatprep.mubr.bf16.mxu1 %v2616_v45 }
  0x9c   : > { %980 = vmatmul.mubr.bf16.gmra.mxu0 %v2617_v49  ;;  %2454 = vmatmul.mubr.bf16.vlgmr.msra.gmra.mxu1 %v2618_v50 }
  0x9d   : > { %987 = vmatprep.mubr.bf16.mxu0 %v2619_v52  ;;  %2457 = vmatprep.mubr.bf16.mxu1 %v2621_v53 }
  0xa4   : > { %988 = vmatmul.mubr.bf16.gmra.mxu0 %v2622_v57  ;;  %2458 = vmatmul.mubr.bf16.gmra.mxu1 %v2623_v58 }
  0xa5   : > { %995 = vmatprep.mubr.bf16.mxu0 %v2624_v60  ;;  %2461 = vmatprep.mubr.bf16.mxu1 %v2626_v61 }
  0xac   : > { %996 = vmatmul.mubr.bf16.gmra.mxu0 %v2627_v1  ;;  %2462 = vmatmul.mubr.bf16.gmra.mxu1 %v2628_v2 }
  0xad   : > { %1003 = vmatprep.mubr.bf16.mxu0 %v2629_v4  ;;  %2465 = vmatprep.mubr.bf16.mxu1 %v2631_v5 }
  0xae   : > { %v3025_v45 = vpop.permute.xlu0 %1399  ;;  %v3031_v48 = vpop.permute.xlu1 %1409 }
  0xb2   : > { %v3035_v53 = vpop.permute.xlu0 %1404  ;;  %v3037_v56 = vpop.permute.xlu1 %1414 }
  0xb4   : > { %1004 = vmatmul.mubr.bf16.gmra.mxu0 %v2632_v7  ;;  %2466 = vmatmul.mubr.bf16.gmra.mxu1 %v2633_v8 }
  0xb5   : > { %1011 = vmatprep.mubr.bf16.mxu0 %v2634_v9  ;;  %2469 = vmatprep.mubr.bf16.mxu1 %v2636_v10 }
  0xb6   : > { %v3041_v61 = vpop.permute.xlu0 %1419  ;;  %v3047_v0 = vpop.permute.xlu1 %1424 }
  0xba   : > { %v3053_v5 = vpop.permute.xlu0 %1429  ;;  %v3055_v8 = vpop.permute.xlu1 %1434 }
  0xbc   : > { %1012 = vmatmul.mubr.bf16.gmra.mxu0 %v2637_v11  ;;  %2470 = vmatmul.mubr.bf16.gmra.mxu1 %v2638_v12 }
  0xbd   : > { %1019 = vmatprep.mubr.bf16.mxu0 %v2639_v13  ;;  %2473 = vmatprep.mubr.bf16.mxu1 %v2641_v14 }
  0xbe   : > { %v3059_v13 = vpop.permute.xlu0 %1439 }
  0xc4   : > { %1020 = vmatmul.mubr.bf16.gmra.mxu0 %v2642_v15  ;;  %2474 = vmatmul.mubr.bf16.gmra.mxu1 %v2643_v16  ;;  %v3065_v16 = vpop.permute.xlu1 %1444 }
  0xc5   : > { %1027 = vmatprep.mubr.bf16.mxu0 %v2644_v17  ;;  %2477 = vmatprep.mubr.bf16.mxu1 %v2646_v18 }
  0xcc   : > { %1028 = vmatmul.mubr.bf16.gmra.mxu0 %v2647_v19  ;;  %2478 = vmatmul.mubr.bf16.gmra.mxu1 %v2648_v20 }
  0xcd   : > { %1035 = vmatprep.mubr.bf16.mxu0 %v2649_v21  ;;  %2481 = vmatprep.mubr.bf16.mxu1 %v2651_v22  ;;  %v3071_v21 = vpop.permute.xlu0 %1449 }
  0xd4   : > { %1036 = vmatmul.mubr.bf16.gmra.mxu0 %v2652_v23  ;;  %2482 = vmatmul.mubr.bf16.gmra.mxu1 %v2653_v24  ;;  %v3073_v24 = vpop.permute.xlu1 %1454 }
  0xd5   : > { %1043 = vmatprep.mubr.bf16.mxu0 %v2654_v25  ;;  %2485 = vmatprep.mubr.bf16.mxu1 %v2656_v26 }
  0xdc   : > { %1044 = vmatmul.mubr.bf16.gmra.mxu0 %v2657_v27  ;;  %2486 = vmatmul.mubr.bf16.gmra.mxu1 %v2658_v28 }
  0xdd   : > { %1051 = vmatprep.mubr.bf16.mxu0 %v2659_v29  ;;  %2489 = vmatprep.mubr.bf16.mxu1 %v2661_v30  ;;  %v3079_v29 = vpop.permute.xlu0 %1459 }
  0xe4   : > { %1052 = vmatmul.mubr.bf16.gmra.mxu0 %v2662_v31  ;;  %2490 = vmatmul.mubr.bf16.gmra.mxu1 %v2663_v32  ;;  %v3083_v32 = vpop.permute.xlu1 %1464 }
  0xe5   : > { %1059 = vmatprep.mubr.bf16.mxu0 %v2664_v33  ;;  %2493 = vmatprep.mubr.bf16.mxu1 %v2666_v34 }
  0xec   : > { %1060 = vmatmul.mubr.bf16.gmra.mxu0 %v2667_v35  ;;  %2494 = vmatmul.mubr.bf16.gmra.mxu1 %v2668_v36 }
  0xed   : > { %1067 = vmatprep.mubr.bf16.mxu0 %v2669_v37  ;;  %2497 = vmatprep.mubr.bf16.mxu1 %v2671_v38  ;;  %v3089_v37 = vpop.permute.xlu0 %1469 }
  0xf4   : > { %1068 = vmatmul.mubr.bf16.gmra.mxu0 %v2672_v39  ;;  %2498 = vmatmul.mubr.bf16.gmra.mxu1 %v2673_v40  ;;  %v3091_v40 = vpop.permute.xlu1 %1474 }
 0x12c   : > { %v3021_v41 = vpop.f32.mrf.mxu0  ;;  %v3023_v42 = vpop.f32.mrf.mxu1 }
 0x12e   : > { %v935_v43 = vpop.f32.mrf.mxu0  ;;  %v1079_v44 = vpop.f32.mrf.mxu1 }
 0x130   : > { %v3027_v46 = vpop.f32.mrf.mxu0  ;;  %v3029_v47 = vpop.f32.mrf.mxu1 }
 0x132   : > { %v938_v49 = vpop.f32.mrf.mxu0  ;;  %v1082_v50 = vpop.f32.mrf.mxu1 }
 0x134   : > { %v941_v51 = vpop.f32.mrf.mxu0  ;;  %v3033_v52 = vpop.f32.mrf.mxu1 }
 0x136   : > { %v943_v54 = vpop.f32.mrf.mxu0  ;;  %v1087_v55 = vpop.f32.mrf.mxu1 }
 0x137   : > { %v3095_v55 = vpop.permute.xlu0 %1479 }
 0x138   : > { %v944_v57 = vpop.f32.mrf.mxu0  ;;  %v3039_v58 = vpop.f32.mrf.mxu1 }
 0x13a   : > { %v946_v59 = vpop.f32.mrf.mxu0  ;;  %v1090_v60 = vpop.f32.mrf.mxu1 }
 0x13c   : > { %v3043_v62 = vpop.f32.mrf.mxu0  ;;  %v3045_v63 = vpop.f32.mrf.mxu1 }
 0x13e   : > { %v951_v1 = vpop.f32.mrf.mxu0  ;;  %v1095_v2 = vpop.f32.mrf.mxu1 }
 0x13f   : > { %v3100_v2 = vpop.permute.xlu1 %1484 }
 0x140   : > { %v3049_v3 = vpop.f32.mrf.mxu0  ;;  %v3051_v4 = vpop.f32.mrf.mxu1 }
 0x142   : > { %v954_v6 = vpop.f32.mrf.mxu0  ;;  %v1098_v7 = vpop.f32.mrf.mxu1 }
 0x144   : > { %v957_v9 = vpop.f32.mrf.mxu0  ;;  %v3057_v10 = vpop.f32.mrf.mxu1 }
 0x146   : > { %v959_v11 = vpop.f32.mrf.mxu0  ;;  %v1103_v12 = vpop.f32.mrf.mxu1 }
 0x148   : > { %v3061_v14 = vpop.f32.mrf.mxu0  ;;  %v3063_v15 = vpop.f32.mrf.mxu1 }
 0x14a   : > { %v962_v17 = vpop.f32.mrf.mxu0  ;;  %v1106_v18 = vpop.f32.mrf.mxu1 }
 0x14c   : > { %v3067_v19 = vpop.f32.mrf.mxu0  ;;  %v3069_v20 = vpop.f32.mrf.mxu1 }
 0x14e   : > { %v967_v22 = vpop.f32.mrf.mxu0  ;;  %v1111_v23 = vpop.f32.mrf.mxu1 }
 0x14f   : > { %v3112_v23 = vpop.permute.xlu0 %1489 }
 0x150   : > { %v3075_v25 = vpop.f32.mrf.mxu0  ;;  %v3077_v26 = vpop.f32.mrf.mxu1 }
 0x152   : > { %v970_v27 = vpop.f32.mrf.mxu0  ;;  %v1114_v28 = vpop.f32.mrf.mxu1 }
 0x154   : > { %v973_v30 = vpop.f32.mrf.mxu0  ;;  %v3081_v31 = vpop.f32.mrf.mxu1 }
 0x156   : > { %v975_v33 = vpop.f32.mrf.mxu0  ;;  %v1119_v34 = vpop.f32.mrf.mxu1 }
 0x157   : > { %v3119_v34 = vpop.permute.xlu1 %1494 }
 0x158   : > { %v3085_v35 = vpop.f32.mrf.mxu0  ;;  %v3087_v36 = vpop.f32.mrf.mxu1 }
 0x15a   : > { %v978_v38 = vpop.f32.mrf.mxu0  ;;  %v1122_v39 = vpop.f32.mrf.mxu1 }
 0x15c   : > { %v3093_v43 = vpop.f32.mrf.mxu0  ;;  %v2455_v44 = vpop.f32.mrf.mxu1 }
 0x15d   : > { %v1167_v49 = vadd.f32 %v2455_v44, %v941_v51 }
 0x15e   : > { %v983_v50 = vpop.f32.mrf.mxu0  ;;  %v1158_v54 = vpop.f32.mrf.mxu1 }
 0x15f   : > { %v1159_v59 = vadd.f32 %v1158_v54, %v3021_v41  ;;  %v3103_v6 = vmul.f32 %v3031_v48, %v1167_v49 }
 0x160   : > { %v3098_v60 = vpop.f32.mrf.mxu0  ;;  %v2456_v1 = vpop.f32.mrf.mxu1 }
 0x161   : > { %v1170_v7 = vadd.f32 %v2456_v1, %v944_v57  ;;  %v3106_v17 = vmul.f32 %v3025_v45, %v1159_v59  ;;  %v3549_v27 = vmax.f32 %v3103_v6, 0.0  ;;  %v3136_v1 = vpop.permute.xlu0 %1499 }
 0x162   : > { %v986_v11 = vpop.f32.mrf.mxu0  ;;  %v1161_v12 = vpop.f32.mrf.mxu1 }
 0x163   : > { %v3109_v51 = vmul.f32 %v3037_v56, %v1170_v7  ;;  %v1162_v18 = vadd.f32 %v1161_v12, %v3027_v46  ;;  %v3551_v56 = vmax.f32 %v3106_v17, 0.0 }
 0x164   : > { %v989_v41 = vpop.f32.mrf.mxu0  ;;  %v2459_v22 = vpop.f32.mrf.mxu1 }
 0x165   : > { %v3544_v48 = vmax.f32 %v3109_v51, 0.0  ;;  %v3117_v57 = vmul.f32 %v3035_v53, %v1162_v18  ;;  %v1183_v28 = vadd.f32 %v2459_v22, %v957_v9 }
 0x166   : > { %v991_v33 = vpop.f32.mrf.mxu0  ;;  %v1174_v45 = vpop.f32.mrf.mxu1 }
 0x167   : > { %v2270_v46 = vpack.c.bf16 %v3544_v48, %v3549_v27  ;;  %v3550_v38 = vmax.f32 %v3117_v57, 0.0  ;;  %v1175_v39 = vadd.f32 %v1174_v45, %v3043_v62  ;;  %v3133_v9 = vmul.f32 %v3053_v5, %v1183_v28  ;;  %v3147_v5 = vpop.permute.xlu1 %1504 }
 0x168   : > { %v992_v44 = vpop.f32.mrf.mxu0  ;;  %v2460_v49 = vpop.f32.mrf.mxu1 }
 0x169   : > { %2382 = vst [vmem:[#allocation3 + $0x8] sm:$0xff] %v2270_v46   ;;  %v2265_v53 = vpack.c.bf16 %v3550_v38, %v3551_v56  ;;  %v1186_v50 = vadd.f32 %v2460_v49, %v3061_v14  ;;  %v3139_v62 = vmul.f32 %v3041_v61, %v1175_v39  ;;  %v3531_v14 = vmax.f32 %v3133_v9, 0.0 }
 0x16a   : > { %v994_v54 = vpop.f32.mrf.mxu0  ;;  %v1177_v59 = vpop.f32.mrf.mxu1 }
 0x16b   : > { %2266 = vst [vmem:[#allocation3] sm:$0xff] %v2265_v53   ;;  %v3142_v7 = vmul.f32 %v3055_v8, %v1186_v50  ;;  %v1178_v11 = vadd.f32 %v1177_v59, %v3049_v3  ;;  %v3535_v8 = vmax.f32 %v3139_v62, 0.0  ;;  %v3163_v50 = vpop.permute.xlu0 %1509 }
 0x16c   : > { %v3145_v12 = vpop.f32.mrf.mxu0  ;;  %v2463_v18 = vpop.f32.mrf.mxu1 }
 0x16d   : > { %v3530_v22 = vmax.f32 %v3142_v7, 0.0  ;;  %v3152_v28 = vmul.f32 %v3047_v0, %v1178_v11  ;;  %v1199_v33 = vadd.f32 %v2463_v18, %v973_v30  ;;  %v3173_v18 = vpop.permute.xlu1 %1514 }
 0x16e   : > { %v999_v61 = vpop.f32.mrf.mxu0  ;;  %v1190_v45 = vpop.f32.mrf.mxu1 }
 0x16f   : > { %v2280_v3 = vpack.c.bf16 %v3530_v22, %v3531_v14  ;;  %v3534_v46 = vmax.f32 %v3152_v28, 0.0  ;;  %v1191_v39 = vadd.f32 %v1190_v45, %v3067_v19  ;;  %v3170_v30 = vmul.f32 %v3071_v21, %v1199_v33  ;;  %v3187_v14 = vpop.permute.xlu0 %1519 }
 0x170   : > { %v3161_v49 = vpop.f32.mrf.mxu0  ;;  %v2464_v53 = vpop.f32.mrf.mxu1 }
 0x171   : > { %2384 = vst [vmem:[#allocation3 + $0x18] sm:$0xff] %v2280_v3   ;;  %v2275_v0 = vpack.c.bf16 %v3534_v46, %v3535_v8  ;;  %v1202_v54 = vadd.f32 %v2464_v53, %v3085_v35  ;;  %v3176_v19 = vmul.f32 %v3059_v13, %v1191_v39  ;;  %v3533_v21 = vmax.f32 %v3170_v30, 0.0 }
 0x172   : > { %v1002_v59 = vpop.f32.mrf.mxu0  ;;  %v1193_v11 = vpop.f32.mrf.mxu1 }
 0x173   : > { %2383 = vst [vmem:[#allocation3 + $0x10] sm:$0xff] %v2275_v0   ;;  %v3179_v61 = vmul.f32 %v3073_v24, %v1202_v54  ;;  %v1194_v45 = vadd.f32 %v1193_v11, %v3075_v25  ;;  %v3537_v13 = vmax.f32 %v3176_v19, 0.0  ;;  %v3212_v8 = vpop.permute.xlu0 %1529 }
 0x174   : > { %v1005_v3 = vpop.f32.mrf.mxu0  ;;  %v2467_v22 = vpop.f32.mrf.mxu1 }
 0x175   : > { %v3532_v33 = vmax.f32 %v3179_v61, 0.0  ;;  %v3185_v35 = vmul.f32 %v3065_v16, %v1194_v45  ;;  %v1215_v53 = vadd.f32 %v2467_v22, %v989_v41  ;;  %v3196_v16 = vpop.permute.xlu1 %1524 }
 0x176   : > { %v1007_v59 = vpop.f32.mrf.mxu0  ;;  %v1206_v0 = vpop.f32.mrf.mxu1 }
 0x177   : > { %v2290_v24 = vpack.c.bf16 %v3532_v33, %v3533_v21  ;;  %v3536_v25 = vmax.f32 %v3185_v35, 0.0  ;;  %v1207_v39 = vadd.f32 %v1206_v0, %v3093_v43  ;;  %v3203_v22 = vmul.f32 %v3089_v37, %v1215_v53 }
 0x178   : > { %v1008_v54 = vpop.f32.mrf.mxu0  ;;  %v2468_v11 = vpop.f32.mrf.mxu1 }
 0x179   : > { %2386 = vst [vmem:[#allocation3 + $0x28] sm:$0xff] %v2290_v24   ;;  %v2285_v41 = vpack.c.bf16 %v3536_v25, %v3537_v13  ;;  %v1218_v45 = vadd.f32 %v2468_v11, %v992_v44  ;;  %v3206_v21 = vmul.f32 %v3079_v29, %v1207_v39  ;;  %v3539_v25 = vmax.f32 %v3203_v22, 0.0  ;;  %v3219_v39 = vpop.permute.xlu1 %1534  ;;  %v3235_v13 = vpop.permute.xlu0 %1539 }
 0x17a   : > { %v1010_v59 = vpop.f32.mrf.mxu0  ;;  %v1209_v33 = vpop.f32.mrf.mxu1 }
 0x17b   : > { %2385 = vst [vmem:[#allocation3 + $0x20] sm:$0xff] %v2285_v41   ;;  %v3209_v43 = vmul.f32 %v3091_v40, %v1218_v45  ;;  %v1210_v0 = vadd.f32 %v1209_v33, %v3098_v60  ;;  %v3541_v40 = vmax.f32 %v3206_v21, 0.0 }
 0x17c   : > { %v1013_v24 = vpop.f32.mrf.mxu0  ;;  %v2471_v46 = vpop.f32.mrf.mxu1 }
 0x17d   : > { %v3538_v37 = vmax.f32 %v3209_v43, 0.0  ;;  %v3217_v44 = vmul.f32 %v3083_v32, %v1210_v0  ;;  %v1231_v53 = vadd.f32 %v2471_v46, %v1005_v3 }
 0x17e   : > { %v1015_v11 = vpop.f32.mrf.mxu0  ;;  %v1222_v29 = vpop.f32.mrf.mxu1 }
 0x17f   : > { %v2300_v60 = vpack.c.bf16 %v3538_v37, %v3539_v25  ;;  %v3540_v33 = vmax.f32 %v3217_v44, 0.0  ;;  %v1223_v41 = vadd.f32 %v1222_v29, %v3145_v12  ;;  %v3233_v46 = vmul.f32 %v3112_v23, %v1231_v53 }
 0x180   : > { %v1016_v45 = vpop.f32.mrf.mxu0  ;;  %v2472_v59 = vpop.f32.mrf.mxu1 }
 0x181   : > { %2388 = vst [vmem:[#allocation3 + $0x38] sm:$0xff] %v2300_v60   ;;  %v2295_v32 = vpack.c.bf16 %v3540_v33, %v3541_v40  ;;  %v1234_v3 = vadd.f32 %v2472_v59, %v1008_v54  ;;  %v3238_v37 = vmul.f32 %v3095_v55, %v1223_v41  ;;  %v3244_v33 = vpop.permute.xlu1 %1544  ;;  %v3543_v23 = vmax.f32 %v3233_v46, 0.0  ;;  %v3257_v40 = vpop.permute.xlu0 %1549 }
 0x182   : > { %v1018_v0 = vpop.f32.mrf.mxu0  ;;  %v1225_v11 = vpop.f32.mrf.mxu1 }
 0x183   : > { %2387 = vst [vmem:[#allocation3 + $0x30] sm:$0xff] %v2295_v32   ;;  %v3241_v12 = vmul.f32 %v3119_v34, %v1234_v3  ;;  %v1226_v29 = vadd.f32 %v1225_v11, %v3161_v49  ;;  %v3546_v41 = vmax.f32 %v3238_v37, 0.0 }
 0x184   : > { %v1021_v60 = vpop.f32.mrf.mxu0  ;;  %v2475_v25 = vpop.f32.mrf.mxu1 }
 0x185   : > { %3576 = vst [vmem:[#allocation13_spill] sm:$0xff] %v3241_v12  ;;  %v3542_v54 = vmax.f32 %v3241_v12, 0.0  ;;  %v3249_v53 = vmul.f32 %v3100_v2, %v1226_v29  ;;  %v1247_v59 = vadd.f32 %v2475_v25, %v1021_v60 }
 0x186   : > { %v1023_v32 = vpop.f32.mrf.mxu0  ;;  %v1238_v55 = vpop.f32.mrf.mxu1 }
 0x187   : > { %v2310_v34 = vpack.c.bf16 %v3542_v54, %v3543_v23  ;;  %v3545_v49 = vmax.f32 %v3249_v53, 0.0  ;;  %v1239_v3 = vadd.f32 %v1238_v55, %v1013_v24  ;;  %v3264_v25 = vmul.f32 %v3163_v50, %v1247_v59  ;;  %v3266_v54 = vpop.permute.xlu1 %1554 }
 0x188   : > { %v1024_v0 = vpop.f32.mrf.mxu0  ;;  %v2476_v11 = vpop.f32.mrf.mxu1 }
 0x189   : > { %2390 = vst [vmem:[#allocation3 + $0x48] sm:$0xff] %v2310_v34   ;;  %v2305_v2 = vpack.c.bf16 %v3545_v49, %v3546_v41  ;;  %3577 = vst [vmem:[#allocation14_spill] sm:$0xff] %v3264_v25  ;;  %v1250_v29 = vadd.f32 %v2476_v11, %v1024_v0  ;;  %v3269_v24 = vmul.f32 %v3136_v1, %v1239_v3  ;;  %v3548_v49 = vmax.f32 %v3264_v25, 0.0 }
 0x18a   : > { %v1026_v60 = vpop.f32.mrf.mxu0  ;;  %v1241_v32 = vpop.f32.mrf.mxu1 }
 0x18b   : > { %2389 = vst [vmem:[#allocation3 + $0x40] sm:$0xff] %v2305_v2   ;;  %3578 = vst [vmem:[#allocation15_spill] sm:$0xff] %v3269_v24  ;;  %v3272_v55 = vmul.f32 %v3173_v18, %v1250_v29  ;;  %v1242_v34 = vadd.f32 %v1241_v32, %v1016_v45  ;;  %v3279_v60 = vpop.permute.xlu0 %1559  ;;  %v3554_v1 = vmax.f32 %v3269_v24, 0.0  ;;  %v3287_v32 = vpop.permute.xlu1 %1564 }
 0x18c   : > { %v1029_v23 = vpop.f32.mrf.mxu0  ;;  %v2479_v48 = vpop.f32.mrf.mxu1 }
 0x18d   : > { %3579 = vst [vmem:[#allocation16_spill] sm:$0xff] %v3272_v55  ;;  %v3547_v50 = vmax.f32 %v3272_v55, 0.0  ;;  %v3277_v59 = vmul.f32 %v3147_v5, %v1242_v34 }
 0x18e   : > { %v1031_v0 = vpop.f32.mrf.mxu0  ;;  %v1254_v11 = vpop.f32.mrf.mxu1 }
 0x18f   : > { %3580 = vst [vmem:[#allocation17_spill] sm:$0xff] %v3277_v59  ;;  %v2320_v18 = vpack.c.bf16 %v3547_v50, %v3548_v49  ;;  %v3553_v45 = vmax.f32 %v3277_v59, 0.0  ;;  %v1255_v3 = vadd.f32 %v1254_v11, %v1029_v23  ;;  %v3296_v23 = vpop.permute.xlu0 %1569  ;;  %v3301_v55 = vpop.permute.xlu1 %1574 }
 0x190   : > { %v1032_v2 = vpop.f32.mrf.mxu0  ;;  %v2480_v29 = vpop.f32.mrf.mxu1 }
 0x191   : > { %2392 = vst [vmem:[#allocation3 + $0x58] sm:$0xff] %v2320_v18   ;;  %v2315_v5 = vpack.c.bf16 %v3553_v45, %v3554_v1  ;;  %v3294_v41 = vmul.f32 %v3187_v14, %v1255_v3 }
 0x192   : > { %v1034_v34 = vpop.f32.mrf.mxu0  ;;  %v1257_v0 = vpop.f32.mrf.mxu1 }
 0x193   : > { %2391 = vst [vmem:[#allocation3 + $0x50] sm:$0xff] %v2315_v5   ;;  %3581 = vst [vmem:[#allocation18_spill] sm:$0xff] %v3294_v41  ;;  %v1258_v50 = vadd.f32 %v1257_v0, %v1032_v2  ;;  %v3559_v34 = vmax.f32 %v3294_v41, 0.0  ;;  %v1585_v25 = vpop.permute.xlu1 %1584 }
 0x194   : > { %v1037_v49 = vpop.f32.mrf.mxu0  ;;  %v2483_v27 = vpop.f32.mrf.mxu1 }
 0x195   : > { %v3299_v11 = vmul.f32 %v3196_v16, %v1258_v50  ;;  %v1263_v18 = vadd.f32 %v2479_v48, %v1037_v49  ;;  %v1580_v49 = vpop.permute.xlu0 %1579 }
 0x196   : > { %v1039_v38 = vpop.f32.mrf.mxu0  ;;  %v1270_v56 = vpop.f32.mrf.mxu1 }
 0x197   : > { %3582 = vst [vmem:[#allocation19_spill] sm:$0xff] %v3299_v11  ;;  %v3558_v5 = vmax.f32 %v3299_v11, 0.0  ;;  %v3310_v2 = vmul.f32 %v3212_v8, %v1263_v18  ;;  %v1595_v24 = vpop.permute.xlu1 %1594 }
 0x198   : > { %v1040_v45 = vpop.f32.mrf.mxu0  ;;  %v2484_v14 = vpop.f32.mrf.mxu1 }
 0x199   : > { %v2325_v3 = vpack.c.bf16 %v3558_v5, %v3559_v34  ;;  %3583 = vst [vmem:[#allocation20_spill] sm:$0xff] %v3310_v2  ;;  %v1266_v16 = vadd.f32 %v2480_v29, %v1040_v45  ;;  %v3564_v41 = vmax.f32 %v3310_v2, 0.0 }
 0x19a   : > { %v1042_v48 = vpop.f32.mrf.mxu0  ;;  %v1273_v38 = vpop.f32.mrf.mxu1 }
 0x19b   : > { %2393 = vst [vmem:[#allocation3 + $0x60] sm:$0xff] %v2325_v3   ;;  %v3313_v50 = vmul.f32 %v3219_v39, %v1266_v16  ;;  %v1590_v39 = vpop.permute.xlu0 %1589 }
 0x19c   : > { %v1045_v0 = vpop.f32.mrf.mxu0  ;;  %v3315_v1 = vpop.f32.mrf.mxu1 }
 0x19d   : > { %3584 = vst [vmem:[#allocation21_spill] sm:$0xff] %v3313_v50  ;;  %v3563_v11 = vmax.f32 %v3313_v50, 0.0  ;;  %v1271_v5 = vadd.f32 %v1270_v56, %v1045_v0 }
 0x19e   : > { %v1047_v34 = vpop.f32.mrf.mxu0  ;;  %v1286_v8 = vpop.f32.mrf.mxu1 }
 0x19f   : > { %v2330_v45 = vpack.c.bf16 %v3563_v11, %v3564_v41  ;;  %v3326_v3 = vmul.f32 %v3235_v13, %v1271_v5  ;;  %v1600_v13 = vpop.permute.xlu0 %1599 }
 0x1a0   : > { %v1048_v29 = vpop.f32.mrf.mxu0  ;;  %v3323_v18 = vpop.f32.mrf.mxu1 }
 0x1a1   : > { %2394 = vst [vmem:[#allocation3 + $0x68] sm:$0xff] %v2330_v45   ;;  %3585 = vst [vmem:[#allocation22_spill] sm:$0xff] %v3326_v3  ;;  %v1274_v16 = vadd.f32 %v1273_v38, %v1048_v29  ;;  %v3569_v50 = vmax.f32 %v3326_v3, 0.0 }
 0x1a2   : > { %v1050_v48 = vpop.f32.mrf.mxu0  ;;  %v1289_v59 = vpop.f32.mrf.mxu1 }
 0x1a3   : > { %v3329_v56 = vmul.f32 %v3244_v33, %v1274_v16  ;;  %v1605_v16 = vpop.permute.xlu1 %1604 }
 0x1a4   : > { %v1053_v34 = vpop.f32.mrf.mxu0  ;;  %v2491_v0 = vpop.f32.mrf.mxu1 }
 0x1a5   : > { %v3568_v11 = vmax.f32 %v3329_v56, 0.0  ;;  %v1279_v41 = vadd.f32 %v2483_v27, %v1053_v34  ;;  %v1311_v2 = vadd.f32 %v2491_v0, %v3033_v52 }
 0x1a6   : > { %v1055_v45 = vpop.f32.mrf.mxu0  ;;  %v1302_v12 = vpop.f32.mrf.mxu1 }
 0x1a7   : > { %v2335_v5 = vpack.c.bf16 %v3568_v11, %v3569_v50  ;;  %v1303_v33 = vadd.f32 %v1302_v12, %v3023_v42  ;;  %v3340_v48 = vmul.f32 %v3257_v40, %v1279_v41  ;;  %v3342_v34 = vmul.f32 %v1590_v39, %v1311_v2  ;;  %v1610_v40 = vpop.permute.xlu0 %1609 }
 0x1a8   : > { %v1056_v38 = vpop.f32.mrf.mxu0  ;;  %v2492_v29 = vpop.f32.mrf.mxu1 }
 0x1a9   : > { %2395 = vst [vmem:[#allocation3 + $0x70] sm:$0xff] %v2335_v5   ;;  %v1282_v27 = vadd.f32 %v2484_v14, %v1056_v38  ;;  %v1314_v52 = vadd.f32 %v2492_v29, %v3039_v58  ;;  %v3345_v3 = vmul.f32 %v1580_v49, %v1303_v33  ;;  %v1715_v41 = vmax.f32 %v3340_v48, 0.0 }
 0x1aa   : > { %v1058_v0 = vpop.f32.mrf.mxu0  ;;  %v1305_v45 = vpop.f32.mrf.mxu1  ;;  %v3571_v49 = vmax.f32 %v3342_v34, 0.0 }
 0x1ab   : > { %v3348_v11 = vmul.f32 %v3266_v54, %v1282_v27  ;;  %v1306_v42 = vadd.f32 %v1305_v45, %v3029_v47  ;;  %v3351_v12 = vmul.f32 %v1595_v24, %v1314_v52  ;;  %v1615_v24 = vpop.permute.xlu1 %1614  ;;  %v1721_v38 = vmax.f32 %v3345_v3, 0.0 }
 0x1ac   : > { %v1061_v5 = vpop.f32.mrf.mxu0  ;;  %v2495_v50 = vpop.f32.mrf.mxu1 }
 0x1ad   : > { %v1716_v14 = vmax.f32 %v3348_v11, 0.0  ;;  %v3355_v2 = vmul.f32 %v1585_v25, %v1306_v42  ;;  %v1287_v58 = vadd.f32 %v1286_v8, %v1061_v5  ;;  %v3570_v39 = vmax.f32 %v3351_v12, 0.0 }
 0x1ae   : > { %v1327_v54 = vadd.f32 %v2495_v50, %v3057_v10  ;;  %v1063_v33 = vpop.f32.mrf.mxu0  ;;  %v1318_v47 = vpop.f32.mrf.mxu1 }
 0x1af   : > { %v2340_v29 = vpack.c.bf16 %v1716_v14, %v1715_v41  ;;  %v3572_v25 = vmax.f32 %v3355_v2, 0.0  ;;  %v2360_v8 = vpack.c.bf16 %v3570_v39, %v3571_v49  ;;  %v1319_v27 = vadd.f32 %v1318_v47, %v3045_v63  ;;  %v1620_v63 = vpop.permute.xlu0 %1619 }
 0x1b0   : > { %v1064_v10 = vpop.f32.mrf.mxu0  ;;  %v2496_v50 = vpop.f32.mrf.mxu1  ;;  %v3376_v0 = vmul.f32 %v3279_v60, %v1287_v58  ;;  %v3378_v42 = vmul.f32 %v1610_v40, %v1327_v54 }
 0x1b1   : > { %2396 = vst [vmem:[#allocation3 + $0x78] sm:$0xff] %v2340_v29   ;;  %v2355_v52 = vpack.c.bf16 %v3572_v25, %v1721_v38  ;;  %v1290_v45 = vadd.f32 %v1289_v59, %v1064_v10  ;;  %2400 = vst [vmem:[#allocation3 + $0x98] sm:$0xff] %v2360_v8   ;;  %v1330_v5 = vadd.f32 %v2496_v50, %v3063_v15  ;;  %v1625_v58 = vpop.permute.xlu1 %1624 }
 0x1b2   : > { %v1066_v33 = vpop.f32.mrf.mxu0  ;;  %v1321_v39 = vpop.f32.mrf.mxu1  ;;  %v3381_v47 = vmul.f32 %v1600_v13, %v1319_v27  ;;  %v1717_v40 = vmax.f32 %v3376_v0, 0.0  ;;  %v3574_v13 = vmax.f32 %v3378_v42, 0.0 }
 0x1b3   : > { %2399 = vst [vmem:[#allocation3 + $0x90] sm:$0xff] %v2355_v52   ;;  %v3384_v29 = vmul.f32 %v3287_v32, %v1290_v45  ;;  %v1322_v49 = vadd.f32 %v1321_v39, %v3051_v4  ;;  %v3387_v25 = vmul.f32 %v1615_v24, %v1330_v5  ;;  %v1630_v52 = vpop.permute.xlu0 %1629 }
 0x1b4   : > { %v1069_v60 = vpop.f32.mrf.mxu0  ;;  %v2499_v59 = vpop.f32.mrf.mxu1  ;;  %v1725_v24 = vmax.f32 %v3381_v47, 0.0 }
 0x1b5   : > { %v1718_v15 = vmax.f32 %v3384_v29, 0.0  ;;  %v3391_v54 = vmul.f32 %v1605_v16, %v1322_v49  ;;  %v1295_v8 = vadd.f32 %v3315_v1, %v1069_v60  ;;  %v3573_v32 = vmax.f32 %v3387_v25, 0.0 }
 0x1b6   : > { %v1343_v27 = vadd.f32 %v2499_v59, %v3081_v31  ;;  %v1071_v4 = vpop.f32.mrf.mxu0  ;;  %v1334_v39 = vpop.f32.mrf.mxu1 }
 0x1b7   : > { %v2345_v10 = vpack.c.bf16 %v1718_v15, %v1717_v40  ;;  %v3575_v16 = vmax.f32 %v3391_v54, 0.0  ;;  %v2370_v1 = vpack.c.bf16 %v3573_v32, %v3574_v13  ;;  %v1335_v49 = vadd.f32 %v1334_v39, %v3069_v20  ;;  %v1635_v39 = vpop.permute.xlu1 %1634 }
 0x1b8   : > { %v1072_v50 = vpop.f32.mrf.mxu0  ;;  %v2500_v31 = vpop.f32.mrf.mxu1  ;;  %v1671_v5 = vmul.f32 %v3296_v23, %v1295_v8  ;;  %v3414_v60 = vmul.f32 %v1630_v52, %v1343_v27 }
 0x1b9   : > { %2397 = vst [vmem:[#allocation3 + $0x80] sm:$0xff] %v2345_v10   ;;  %v2365_v45 = vpack.c.bf16 %v3575_v16, %v1725_v24  ;;  %v1298_v33 = vadd.f32 %v3323_v18, %v1072_v50  ;;  %2402 = vst [vmem:[#allocation3 + $0xa8] sm:$0xff] %v2370_v1   ;;  %v1346_v59 = vadd.f32 %v2500_v31, %v3087_v36 }
 0x1ba   : > { %v1074_v4 = vpop.f32.mrf.mxu0  ;;  %v1337_v20 = vpop.f32.mrf.mxu1  ;;  %v3417_v32 = vmul.f32 %v1620_v63, %v1335_v49  ;;  %v1719_v23 = vmax.f32 %v1671_v5, 0.0  ;;  %v1731_v27 = vmax.f32 %v3414_v60, 0.0 }
 0x1bb   : > { %2401 = vst [vmem:[#allocation3 + $0xa0] sm:$0xff] %v2365_v45   ;;  %v1672_v10 = vmul.f32 %v3301_v55, %v1298_v33  ;;  %v1338_v13 = vadd.f32 %v1337_v20, %v3077_v26  ;;  %v3421_v16 = vmul.f32 %v1635_v39, %v1346_v59 }
 0x1bc   : > { %v1729_v36 = vmax.f32 %v3417_v32, 0.0 }
 0x1bd   : > { %v1720_v8 = vmax.f32 %v1672_v10, 0.0  ;;  %v1682_v18 = vmul.f32 %v1625_v58, %v1338_v13  ;;  %v1732_v1 = vmax.f32 %v3421_v16, 0.0 }
 0x1bf   : > { %v2350_v50 = vpack.c.bf16 %v1720_v8, %v1719_v23  ;;  %v1730_v31 = vmax.f32 %v1682_v18, 0.0  ;;  %v2380_v52 = vpack.c.bf16 %v1732_v1, %v1731_v27  ;;  %1976 = sbr.rel (%p2209_p9) target bundleno = 478 (0x1de), region = 41 }
 0x1c1   : > { %2398 = vst [vmem:[#allocation3 + $0x88] sm:$0xff] %v2350_v50   ;;  %v2375_v63 = vpack.c.bf16 %v1730_v31, %v1729_v36  ;;  %2404 = vst [vmem:[#allocation3 + $0xb8] sm:$0xff] %v2380_v52  }
 0x1c3   : > { %2403 = vst [vmem:[#allocation3 + $0xb0] sm:$0xff] %v2375_v63  }
 0x1c4   : > { %v3586_v26 = vmax.f32 %v3106_v17, 0.0  ;;  %v3587_v55 = vmax.f32 %v3117_v57, 0.0  ;;  %v3588_v58 = vmax.f32 %v3103_v6, 0.0  ;;  %v3589_v13 = vmax.f32 %v3109_v51, 0.0  ;;  %v3619_v39 = vld [vmem:[#allocation20_spill] sm:$0xff]  ;;  %v3621_v18 = vld [vmem:[#allocation21_spill] sm:$0xff] }
 0x1c5   : > { %v3590_v32 = vmax.f32 %v3139_v62, 0.0  ;;  %v3591_v16 = vmax.f32 %v3152_v28, 0.0  ;;  %v3592_v49 = vmax.f32 %v3133_v9, 0.0  ;;  %v3593_v17 = vmax.f32 %v3142_v7, 0.0  ;;  %v3623_v52 = vld [vmem:[#allocation22_spill] sm:$0xff]  ;;  %2007 = vst [vmem:[#allocation4 + $0xf0] sm:$0xff] %v1715_v41 }
 0x1c6   : > { %1977 = vst [vmem:[#allocation4] sm:$0xff] %v3586_v26  ;;  %1978 = vst [vmem:[#allocation4 + $0x8] sm:$0xff] %v3587_v55  ;;  %v3594_v57 = vmax.f32 %v3176_v19, 0.0  ;;  %v3595_v6 = vmax.f32 %v3185_v35, 0.0  ;;  %v3596_v51 = vmax.f32 %v3170_v30, 0.0  ;;  %v3597_v62 = vmax.f32 %v3179_v61, 0.0 }
 0x1c7   : > { %1979 = vst [vmem:[#allocation4 + $0x10] sm:$0xff] %v3588_v58  ;;  %1980 = vst [vmem:[#allocation4 + $0x18] sm:$0xff] %v3589_v13  ;;  %v3598_v28 = vmax.f32 %v3206_v21, 0.0  ;;  %v3599_v9 = vmax.f32 %v3217_v44, 0.0  ;;  %v3600_v7 = vmax.f32 %v3203_v22, 0.0  ;;  %v3601_v19 = vmax.f32 %v3209_v43, 0.0 }
 0x1c8   : > { %1981 = vst [vmem:[#allocation4 + $0x20] sm:$0xff] %v3590_v32  ;;  %1982 = vst [vmem:[#allocation4 + $0x28] sm:$0xff] %v3591_v16  ;;  %v3602_v35 = vmax.f32 %v3238_v37, 0.0  ;;  %v3603_v30 = vmax.f32 %v3249_v53, 0.0  ;;  %v3604_v61 = vmax.f32 %v3233_v46, 0.0  ;;  %v3605_v21 = vld [vmem:[#allocation13_spill] sm:$0xff] }
 0x1c9   : > { %1983 = vst [vmem:[#allocation4 + $0x30] sm:$0xff] %v3592_v49  ;;  %1984 = vst [vmem:[#allocation4 + $0x38] sm:$0xff] %v3593_v17  ;;  %v3606_v45 = vmax.f32 %v3605_v21, 0.0  ;;  %v3607_v44 = vld [vmem:[#allocation15_spill] sm:$0xff]  ;;  %v3609_v22 = vld [vmem:[#allocation17_spill] sm:$0xff]  ;;  %v3620_v10 = vmax.f32 %v3619_v39, 0.0 }
 0x1ca   : > { %1985 = vst [vmem:[#allocation4 + $0x40] sm:$0xff] %v3594_v57  ;;  %1986 = vst [vmem:[#allocation4 + $0x48] sm:$0xff] %v3595_v6  ;;  %v3608_v5 = vmax.f32 %v3607_v44, 0.0  ;;  %v3610_v33 = vmax.f32 %v3609_v22, 0.0  ;;  %v3611_v43 = vld [vmem:[#allocation14_spill] sm:$0xff]  ;;  %v3613_v37 = vld [vmem:[#allocation16_spill] sm:$0xff] }
 0x1cb   : > { %1987 = vst [vmem:[#allocation4 + $0x50] sm:$0xff] %v3596_v51  ;;  %1988 = vst [vmem:[#allocation4 + $0x58] sm:$0xff] %v3597_v62  ;;  %v3612_v60 = vmax.f32 %v3611_v43, 0.0  ;;  %v3614_v59 = vmax.f32 %v3613_v37, 0.0  ;;  %v3615_v53 = vld [vmem:[#allocation18_spill] sm:$0xff]  ;;  %v3617_v46 = vld [vmem:[#allocation19_spill] sm:$0xff] }
 0x1cc   : > { %1989 = vst [vmem:[#allocation4 + $0x60] sm:$0xff] %v3598_v28  ;;  %1990 = vst [vmem:[#allocation4 + $0x68] sm:$0xff] %v3599_v9  ;;  %v3616_v4 = vmax.f32 %v3615_v53, 0.0  ;;  %v3618_v20 = vmax.f32 %v3617_v46, 0.0  ;;  %v3622_v50 = vmax.f32 %v3621_v18, 0.0  ;;  %v3624_v63 = vmax.f32 %v3623_v52, 0.0 }
 0x1cd   : > { %1991 = vst [vmem:[#allocation4 + $0x70] sm:$0xff] %v3600_v7  ;;  %1992 = vst [vmem:[#allocation4 + $0x78] sm:$0xff] %v3601_v19  ;;  %v3625_v26 = vmax.f32 %v3329_v56, 0.0  ;;  %v3626_v56 = vmax.f32 %v3355_v2, 0.0  ;;  %v3627_v48 = vmax.f32 %v3342_v34, 0.0  ;;  %v3628_v11 = vmax.f32 %v3351_v12, 0.0 }
 0x1ce   : > { %1993 = vst [vmem:[#allocation4 + $0x80] sm:$0xff] %v3602_v35  ;;  %1994 = vst [vmem:[#allocation4 + $0x88] sm:$0xff] %v3603_v30  ;;  %v3629_v41 = vmax.f32 %v3391_v54, 0.0  ;;  %v3631_v3 = vmax.f32 %v3387_v25, 0.0 }
 0x1cf   : > { %1995 = vst [vmem:[#allocation4 + $0x90] sm:$0xff] %v3604_v61  ;;  %1996 = vst [vmem:[#allocation4 + $0x98] sm:$0xff] %v3606_v45 }
 0x1d0   : > { %1997 = vst [vmem:[#allocation4 + $0xa0] sm:$0xff] %v3608_v5  ;;  %1998 = vst [vmem:[#allocation4 + $0xa8] sm:$0xff] %v3610_v33 }
 0x1d1   : > { %1999 = vst [vmem:[#allocation4 + $0xb0] sm:$0xff] %v3612_v60  ;;  %2000 = vst [vmem:[#allocation4 + $0xb8] sm:$0xff] %v3614_v59 }
 0x1d2   : > { %2001 = vst [vmem:[#allocation4 + $0xc0] sm:$0xff] %v3616_v4  ;;  %2002 = vst [vmem:[#allocation4 + $0xc8] sm:$0xff] %v3618_v20 }
 0x1d3   : > { %2003 = vst [vmem:[#allocation4 + $0xd0] sm:$0xff] %v3620_v10  ;;  %2004 = vst [vmem:[#allocation4 + $0xd8] sm:$0xff] %v3622_v50 }
 0x1d4   : > { %2005 = vst [vmem:[#allocation4 + $0xe0] sm:$0xff] %v3624_v63  ;;  %2006 = vst [vmem:[#allocation4 + $0xe8] sm:$0xff] %v3625_v26 }
 0x1d5   : > { %2008 = vst [vmem:[#allocation4 + $0xf8] sm:$0xff] %v1716_v14  ;;  %2009 = vst [vmem:[#allocation4 + $0x100] sm:$0xff] %v1717_v40  ;;  %v3630_v14 = vmax.f32 %v3378_v42, 0.0 }
 0x1d6   : > { %2010 = vst [vmem:[#allocation4 + $0x108] sm:$0xff] %v1718_v15  ;;  %2011 = vst [vmem:[#allocation4 + $0x110] sm:$0xff] %v1719_v23 }
 0x1d7   : > { %2012 = vst [vmem:[#allocation4 + $0x118] sm:$0xff] %v1720_v8  ;;  %2013 = vst [vmem:[#allocation4 + $0x120] sm:$0xff] %v1721_v38 }
 0x1d8   : > { %2014 = vst [vmem:[#allocation4 + $0x128] sm:$0xff] %v3626_v56  ;;  %2015 = vst [vmem:[#allocation4 + $0x130] sm:$0xff] %v3627_v48 }
 0x1d9   : > { %2016 = vst [vmem:[#allocation4 + $0x138] sm:$0xff] %v3628_v11  ;;  %2017 = vst [vmem:[#allocation4 + $0x140] sm:$0xff] %v1725_v24 }
 0x1da   : > { %2018 = vst [vmem:[#allocation4 + $0x148] sm:$0xff] %v3629_v41  ;;  %2019 = vst [vmem:[#allocation4 + $0x150] sm:$0xff] %v3630_v14 }
 0x1db   : > { %2020 = vst [vmem:[#allocation4 + $0x158] sm:$0xff] %v3631_v3  ;;  %2021 = vst [vmem:[#allocation4 + $0x160] sm:$0xff] %v1729_v36 }
 0x1dc   : > { %2022 = vst [vmem:[#allocation4 + $0x168] sm:$0xff] %v1730_v31  ;;  %2023 = vst [vmem:[#allocation4 + $0x170] sm:$0xff] %v1731_v27 }
 0x1dd   : > { %2024 = vst [vmem:[#allocation4 + $0x178] sm:$0xff] %v1732_v1 }
 0x1de PF: > { %p2537_p10 = scmp.eq.s32.totalorder %s2763_s13, 1  ;;  %s2734_s11 = smov [#allocation4]  }
 0x1df   : > { %s2031_s14 = sshll.u32 %s2734_s11, 4  ;;  %s2032_s14 = int_to_ptr.vmem [resolvable:$true] %s2031_s14 }
 0x1e0   : > { %s2694_s15 = scalar_lea.vmem %s2032_s14, 6144  ;;  %p2701_p0 = scmp.lt.s32.totalorder %s2032_s14, %s2032_s14 }
 0x1e1   : > { %p2695_p11 = scmp.ne.s32.totalorder %s2032_s14, %s2694_s15  ;;  %p2702_p1 = scmp.lt.s32.totalorder %s2694_s15, %s2694_s15 }
 0x1e3   : > { %p2696_p12 = pnand %p2695_p11, %p2537_p10  ;;  %p2703_p2 = por %p2702_p1, %p2701_p0 }
 0x1e5   : > { %p2697_p13 = pneg %p2696_p12 }
 0x1e7   : > { %p2704_p3 = pnand %p2703_p2, %p2697_p13 }
 0x1e9   : > { %2707 = shalt.err (!%p2704_p3)
}
 0x1ea   : > { %s2735_s16 = smov 128   ;;  %s2736_s17 = smov 8  }
 0x1eb   : > { %2534 = dma.vmem_to_hbm [thread:$0]  (%p2537_p10), %s2032_s14, 6144, %s3529_s3, [#allocation5], %s2735_s16, %s2735_s16, %s2736_s17  }
 0x1ec   : > { %2725 = dma.done.wait (%p2537_p10), [#allocation5], 6144  }
 0x1ed   : > { %2727 = vsyncadd (%p2537_p10), [#allocation5], 4294961152 }
 0x1ee PF: > { %s14_s12 = sadd.s32 1, %s2730_s12  }
 0x1ef   : > { %p11_p4 = scmp.ge.s32.totalorder %s14_s12, 4  }
 0x1f1   :  { %13 = sbr.rel (!%p11_p4) target bundleno = 1 (0x1), region = 65 }
 0x1f6   :  { %2047 = vsyncpa [#allocation5], 1 }
 0x1f7   :  { %2049 = vsyncpa [#allocation5 + $0x1], 1 }

</bundles_post_ra>
